<compile_context>
chip_gen: v6e
topology: v6e:2x2x1
jax: 0.10.0
libtpu: 0.0.40
codegen_flags: <defaults>
</compile_context>

<pallas_src>
import functools

import jax
import jax.numpy as jnp
import numpy as np
from jax import lax
from jax.experimental import pallas as pl
from jax.experimental.pallas import tpu as pltpu

_EPS = 1e-5


def _round_up(x, m):
    return ((x + m - 1) // m) * m


def _tpu_tile_params(cout):
    """Pick (output lane tile, vmem budget) for the local TPU generation."""
    try:
        kind = jax.devices()[0].device_kind.lower()
    except Exception:
        kind = ""
    wide_mxu = ("v6" in kind) or ("v7" in kind)          # 256-wide MXU columns
    lane = 256 if (wide_mxu and cout >= 256) else 128
    if "v7" in kind:
        vmem = 48 * 1024 * 1024                          # v7x: 64 MiB physical
    elif ("v5" in kind) or ("v6" in kind):
        vmem = 100 * 1024 * 1024                         # 128 MiB physical
    else:
        vmem = 48 * 1024 * 1024                          # conservative default
    return lane, vmem


# ---------------------------------------------------------------------------
# Pallas kernel: fused 3x3 conv + folded-BN bias (+ ReLU), banded over rows
# ---------------------------------------------------------------------------
def _conv3x3_bn_kernel(x_ref, w_ref, b_ref, o_ref, *, group_off, band_m,
                       n_bands, relu):
    """One image x one lane-wide output-channel tile.

    x_ref : (1, L, K)      bf16  flattened (possibly kj-folded) padded image
    w_ref : (G*K, TN)      bf16  BN-scale-folded weights, tap-group major
    b_ref : (1, TN)        f32   folded BN bias
    o_ref : (1, M_pad, TN)       output canvas (junk cols/rows stripped later)

    For tap group g, canvas rows [start, start+band_m) need flattened-input
    rows [start+group_off[g], ...+band_m) -- a constant shift -- so the conv
    is len(group_off) shifted matmuls per row band.  The f32 accumulator of a
    band stays in vregs; o_ref is written once per band.
    """
    k_grp = x_ref.shape[2]
    tn = o_ref.shape[2]
    bias = b_ref[...]                              # (1, TN), hoisted

    def band_body(start):
        acc = jnp.zeros((band_m, tn), jnp.float32)
        for g, off in enumerate(group_off):
            lhs = x_ref[0, pl.ds(start + off, band_m), :]       # (band_m, K)
            rhs = w_ref[g * k_grp:(g + 1) * k_grp, :]           # (K, TN)
            acc = acc + jnp.dot(lhs, rhs, preferred_element_type=jnp.float32)
        y = acc + bias
        if relu:
            y = jnp.maximum(y, 0.0)
        o_ref[0, pl.ds(start, band_m), :] = y.astype(o_ref.dtype)

    if n_bands <= 4:                               # small images: static slices
        for band in range(n_bands):
            band_body(band * band_m)
    else:
        def step(band, carry):
            band_body(pl.multiple_of(band * band_m, band_m))
            return carry
        lax.fori_loop(0, n_bands, step, 0)


# ---------------------------------------------------------------------------
# Wrapper: NHWC 3x3 conv (padding=1, bias-free) with BN folded in
# ---------------------------------------------------------------------------
def conv3x3_bn(x, w_folded, bias, *, stride=1, relu=False,
               out_dtype=jnp.float32):
    """x: (B,H,W,Cin); w_folded: (3,3,Cin,Cout) f32 (already BN-scaled);
    bias: (Cout,) f32 folded BN bias."""
    B, H, W, Cin = x.shape
    Cout = w_folded.shape[-1]
    if stride not in (1, 2):
        raise NotImplementedError("only stride 1 / 2 supported")

    Wp = W + 2                                    # padded width
    H_out = (H - 1) // stride + 1

    lane, vmem_limit = _tpu_tile_params(Cout)
    n_tiles = pl.cdiv(Cout, lane)
    Cout_p = n_tiles * lane

    # Canvas geometry: M real canvas rows (H_out rows x Wp stride-1 columns),
    # processed in n_bands row bands (band accumulator ~32 f32 vregs).
    M = H_out * Wp
    band_target = 256 if lane == 128 else 128
    n_bands = pl.cdiv(M, band_target)
    band_m = _round_up(pl.cdiv(M, n_bands), 8)
    M_pad = n_bands * band_m

    xp = jnp.pad(x.astype(jnp.bfloat16), ((0, 0), (1, 1), (1, 1), (0, 0)))

    if stride == 1:
        x_flat = xp.reshape(B, -1, Cin)
        need = M_pad + 2 * Wp + 2
        x_flat = jnp.pad(x_flat, ((0, 0), (0, need - x_flat.shape[1]), (0, 0)))
        base = (0, Wp, 2 * Wp)                    # ki -> flattened row offset
    else:
        # stride 2: split padded rows into even/odd phases so every ki tap is
        # still a constant shift of one flattened array; only H_out canvas
        # rows are computed (2x less work than conv-then-subsample).
        ev = xp[:, 0::2].reshape(B, -1, Cin)
        od = xp[:, 1::2].reshape(B, -1, Cin)
        le = M_pad + Wp + 2                       # padded length of even part
        lo = M_pad + 2
        ev = jnp.pad(ev, ((0, 0), (0, le - ev.shape[1]), (0, 0)))
        od = jnp.pad(od, ((0, 0), (0, max(0, lo - od.shape[1])), (0, 0)))
        x_flat = jnp.concatenate([ev, od], axis=1)
        base = (0, le, Wp)                        # ki=0 even, ki=1 odd, ki=2 even+1

    # Tap/K fusion: for Cin below the MXU contraction depth, fold the three kj
    # taps into the channel (lane) axis in the wrapper -> 3 matmuls with
    # K = 3*Cin per band (lane-dense lhs) instead of 9 matmuls with K = Cin.
    fuse_kj = Cin < 128
    if fuse_kj:
        l3 = x_flat.shape[1] - 2
        x_flat = jnp.concatenate(
            [x_flat[:, kj:kj + l3, :] for kj in range(3)], axis=-1)
        group_off = base                          # one group per ki
    else:
        group_off = tuple(base[ki] + kj for ki in range(3) for kj in range(3))

    w_mat = jnp.pad(w_folded.reshape(9 * Cin, Cout),
                    ((0, 0), (0, Cout_p - Cout))).astype(jnp.bfloat16)
    b_mat = jnp.pad(bias.reshape(1, Cout),
                    ((0, 0), (0, Cout_p - Cout))).astype(jnp.float32)

    kernel = functools.partial(_conv3x3_bn_kernel, group_off=group_off,
                               band_m=band_m, n_bands=n_bands, relu=relu)

    # Grid order: keep whichever operand would otherwise be re-read the most
    # from HBM resident across the inner (fast) grid axis.
    x_bytes = x_flat.size * x_flat.dtype.itemsize
    w_bytes = w_mat.size * w_mat.dtype.itemsize
    if w_bytes * (B - 1) > x_bytes * (n_tiles - 1):
        grid = (n_tiles, B)                       # weights resident across batch
        x_map = lambda n, b: (b, 0, 0)
        wb_map = lambda n, b: (0, n)
        o_map = lambda n, b: (b, 0, n)
    else:
        grid = (B, n_tiles)                       # activations resident across tiles
        x_map = lambda b, n: (b, 0, 0)
        wb_map = lambda b, n: (0, n)
        o_map = lambda b, n: (b, 0, n)

    out = pl.pallas_call(
        kernel,
        out_shape=jax.ShapeDtypeStruct((B, M_pad, Cout_p), out_dtype),
        grid_spec=pltpu.PrefetchScalarGridSpec(
            num_scalar_prefetch=0,
            grid=grid,
            in_specs=[
                pl.BlockSpec((1,) + tuple(x_flat.shape[1:]), x_map),
                pl.BlockSpec((9 * Cin, lane), wb_map),
                pl.BlockSpec((1, lane), wb_map),
            ],
            out_specs=pl.BlockSpec((1, M_pad, lane), o_map),
        ),
        compiler_params=pltpu.CompilerParams(
            dimension_semantics=("parallel", "parallel"),
            vmem_limit_bytes=vmem_limit,
        ),
    )(x_flat, w_mat, b_mat)

    out = out[:, :M, :].reshape(B, H_out, Wp, Cout_p)
    # Strip junk columns; column-subsample for stride 2 (rows already strided).
    return out[:, :, 0:W:stride, :Cout]


# ---------------------------------------------------------------------------
# BN folding + ShaResBlock forward (NHWC)
# ---------------------------------------------------------------------------
def fold_bn(gamma, beta, mean, var, eps=_EPS):
    scale = gamma / jnp.sqrt(var + eps)
    return scale, beta - mean * scale


def sha_res_block_forward(x_nhwc, params, *, stride=1):
    """ShaResBlock.forward: conv3x3_block (BN+ReLU) -> sha_conv3x3_block (BN)."""
    s1, b1 = fold_bn(params["bn1_gamma"], params["bn1_beta"],
                     params["bn1_mean"], params["bn1_var"])
    y1 = conv3x3_bn(x_nhwc, params["w1"] * s1, b1,
                    stride=stride, relu=True, out_dtype=jnp.bfloat16)

    # conv2: the (possibly shared) 3x3 conv, stride 1, BN, NO activation.
    s2, b2 = fold_bn(params["bn2_gamma"], params["bn2_beta"],
                     params["bn2_mean"], params["bn2_var"])
    y2 = conv3x3_bn(y1, params["w2"] * s2, b2,
                    stride=1, relu=False, out_dtype=jnp.float32)
    return y2


# ---------------------------------------------------------------------------
# Reference (lax.conv).  Operands are rounded to bf16 at the same points as
# the Pallas path so the comparison isolates kernel correctness from bf16
# MXU-operand quantisation; math is otherwise the eval-mode PyTorch module.
# ---------------------------------------------------------------------------
def reference_forward(x, params, *, stride=1):
    def conv_bn(xin, w, gamma, beta, mean, var, s, relu):
        scale = gamma / jnp.sqrt(var + _EPS)
        bias = beta - mean * scale
        wq = (w * scale).astype(jnp.bfloat16).astype(jnp.float32)
        xq = xin.astype(jnp.bfloat16).astype(jnp.float32)
        y = jax.lax.conv_general_dilated(
            xq, wq, (s, s), [(1, 1), (1, 1)],
            dimension_numbers=("NHWC", "HWIO", "NHWC"),
            precision=jax.lax.Precision.HIGHEST) + bias
        return jnp.maximum(y, 0.0) if relu else y

    y1 = conv_bn(x, params["w1"], params["bn1_gamma"], params["bn1_beta"],
                 params["bn1_mean"], params["bn1_var"], stride, True)
    y1 = y1.astype(jnp.bfloat16)          # kernel emits the intermediate in bf16
    y2 = conv_bn(y1, params["w2"], params["bn2_gamma"], params["bn2_beta"],
                 params["bn2_mean"], params["bn2_var"], 1, False)
    return y2


# ---------------------------------------------------------------------------
if __name__ == "__main__":
    B, Cin, Cout, H, W = 2, 8, 16, 16, 16

    key = jax.random.PRNGKey(0)
    ks = jax.random.split(key, 3)
    x = jax.random.normal(ks[0], (B, H, W, Cin), jnp.float32)

    def bn_params(c, shift):
        r = jnp.arange(c, dtype=jnp.float32)
        return dict(gamma=1.0 + 0.05 * r + shift,
                    beta=0.05 * r - shift,
                    mean=0.02 * r + 0.5 * shift,
                    var=1.0 + 0.05 * r)

    bn1, bn2 = bn_params(Cout, 0.0), bn_params(Cout, 0.1)
    params = dict(
        w1=0.2 * jax.random.normal(ks[1], (3, 3, Cin, Cout), jnp.float32),
        w2=0.2 * jax.random.normal(ks[2], (3, 3, Cout, Cout), jnp.float32),
        bn1_gamma=bn1["gamma"], bn1_beta=bn1["beta"],
        bn1_mean=bn1["mean"], bn1_var=bn1["var"],
        bn2_gamma=bn2["gamma"], bn2_beta=bn2["beta"],
        bn2_mean=bn2["mean"], bn2_var=bn2["var"],
    )

    fwd = jax.jit(sha_res_block_forward, static_argnames=("stride",))
    for stride in (1, 2):
        out = jax.block_until_ready(fwd(x, params, stride=stride))
        ref = jax.block_until_ready(reference_forward(x, params, stride=stride))
        assert out.shape == (B, H // stride, W // stride, Cout), out.shape
        np.testing.assert_allclose(np.asarray(out), np.asarray(ref),
                                   rtol=2e-2, atol=2e-2)

    print("KERNEL_OK")
</pallas_src>

<mosaic_0001>
module attributes {stable_mosaic.version = 11 : i64} {
  func.func @_conv3x3_bn_kernel(%arg0: i32, %arg1: i32, %arg2: memref<1x324x24xbf16, #tpu.memory_space<vmem>>, %arg3: memref<72x128xbf16, #tpu.memory_space<vmem>>, %arg4: memref<1x128xf32, #tpu.memory_space<vmem>>, %arg5: memref<1x288x128xbf16, #tpu.memory_space<vmem>>) attributes {dimension_semantics = [#tpu.dimension_semantics<parallel>, #tpu.dimension_semantics<parallel>], iteration_bounds = array<i64: 1, 2>, scalar_prefetch = 0 : i64, scratch_operands = 0 : i64, tpu.core_type = #tpu.core_type<tc>, window_params = [{transform_indices = @transform_0, window_bounds = array<i64: 1, 324, 24>}, {transform_indices = @transform_1, window_bounds = array<i64: 72, 128>}, {transform_indices = @transform_2, window_bounds = array<i64: 1, 128>}, {transform_indices = @transform_3, window_bounds = array<i64: 1, 288, 128>}]} {
    %c0 = arith.constant 0 : index
    %c0_0 = arith.constant 0 : index
    %0 = vector.load %arg4[%c0, %c0_0] : memref<1x128xf32, #tpu.memory_space<vmem>>, vector<1x128xf32>
    %cst = arith.constant 0.000000e+00 : f32
    %1 = vector.broadcast %cst : f32 to vector<144x128xf32>
    %c0_1 = arith.constant 0 : index
    %c0_2 = arith.constant 0 : index
    %c0_3 = arith.constant 0 : index
    %2 = vector.load %arg2[%c0_1, %c0_2, %c0_3] : memref<1x324x24xbf16, #tpu.memory_space<vmem>>, vector<1x144x24xbf16>
    %3 = vector.shape_cast %2 : vector<1x144x24xbf16> to vector<144x24xbf16>
    %c0_4 = arith.constant 0 : index
    %c0_5 = arith.constant 0 : index
    %4 = vector.load %arg3[%c0_4, %c0_5] : memref<72x128xbf16, #tpu.memory_space<vmem>>, vector<24x128xbf16>
    %cst_6 = arith.constant dense<0.000000e+00> : vector<144x128xf32>
    %5 = tpu.matmul %3, %4, %cst_6 {dimension_numbers = #tpu.dot_dimension_numbers<[1], [0], [0], [1], [0, 0, 1, 1], [], []>} : vector<144x24xbf16>, vector<24x128xbf16>, vector<144x128xf32> -> vector<144x128xf32>
    %6 = arith.addf %1, %5 : vector<144x128xf32>
    %c0_7 = arith.constant 0 : index
    %c18 = arith.constant 18 : index
    %c0_8 = arith.constant 0 : index
    %7 = vector.load %arg2[%c0_7, %c18, %c0_8] : memref<1x324x24xbf16, #tpu.memory_space<vmem>>, vector<1x144x24xbf16>
    %8 = vector.shape_cast %7 : vector<1x144x24xbf16> to vector<144x24xbf16>
    %c24 = arith.constant 24 : index
    %c0_9 = arith.constant 0 : index
    %9 = vector.load %arg3[%c24, %c0_9] : memref<72x128xbf16, #tpu.memory_space<vmem>>, vector<24x128xbf16>
    %cst_10 = arith.constant dense<0.000000e+00> : vector<144x128xf32>
    %10 = tpu.matmul %8, %9, %cst_10 {dimension_numbers = #tpu.dot_dimension_numbers<[1], [0], [0], [1], [0, 0, 1, 1], [], []>} : vector<144x24xbf16>, vector<24x128xbf16>, vector<144x128xf32> -> vector<144x128xf32>
    %11 = arith.addf %6, %10 : vector<144x128xf32>
    %c0_11 = arith.constant 0 : index
    %c36 = arith.constant 36 : index
    %c0_12 = arith.constant 0 : index
    %12 = vector.load %arg2[%c0_11, %c36, %c0_12] : memref<1x324x24xbf16, #tpu.memory_space<vmem>>, vector<1x144x24xbf16>
    %13 = vector.shape_cast %12 : vector<1x144x24xbf16> to vector<144x24xbf16>
    %c48 = arith.constant 48 : index
    %c0_13 = arith.constant 0 : index
    %14 = vector.load %arg3[%c48, %c0_13] : memref<72x128xbf16, #tpu.memory_space<vmem>>, vector<24x128xbf16>
    %cst_14 = arith.constant dense<0.000000e+00> : vector<144x128xf32>
    %15 = tpu.matmul %13, %14, %cst_14 {dimension_numbers = #tpu.dot_dimension_numbers<[1], [0], [0], [1], [0, 0, 1, 1], [], []>} : vector<144x24xbf16>, vector<24x128xbf16>, vector<144x128xf32> -> vector<144x128xf32>
    %16 = arith.addf %11, %15 : vector<144x128xf32>
    %17 = vector.broadcast %0 : vector<1x128xf32> to vector<144x128xf32>
    %18 = arith.addf %16, %17 : vector<144x128xf32>
    %cst_15 = arith.constant 0.000000e+00 : f32
    %19 = vector.broadcast %cst_15 : f32 to vector<144x128xf32>
    %20 = arith.maximumf %18, %19 : vector<144x128xf32>
    %21 = arith.truncf %20 : vector<144x128xf32> to vector<144x128xbf16>
    %c0_16 = arith.constant 0 : index
    %c0_17 = arith.constant 0 : index
    %c0_18 = arith.constant 0 : index
    %22 = vector.load %arg5[%c0_16, %c0_17, %c0_18] : memref<1x288x128xbf16, #tpu.memory_space<vmem>>, vector<1x144x128xbf16>
    %23 = vector.shape_cast %22 : vector<1x144x128xbf16> to vector<144x128xbf16>
    %24 = vector.shape_cast %21 : vector<144x128xbf16> to vector<1x144x128xbf16>
    tpu.vector_store %arg5[%c0_16, %c0_17, %c0_18], %24 {strides = array<i32>} : memref<1x288x128xbf16, #tpu.memory_space<vmem>>, vector<1x144x128xbf16>,
    %cst_19 = arith.constant 0.000000e+00 : f32
    %25 = vector.broadcast %cst_19 : f32 to vector<144x128xf32>
    %c0_20 = arith.constant 0 : index
    %c144 = arith.constant 144 : index
    %c0_21 = arith.constant 0 : index
    %26 = vector.load %arg2[%c0_20, %c144, %c0_21] : memref<1x324x24xbf16, #tpu.memory_space<vmem>>, vector<1x144x24xbf16>
    %27 = vector.shape_cast %26 : vector<1x144x24xbf16> to vector<144x24xbf16>
    %c0_22 = arith.constant 0 : index
    %c0_23 = arith.constant 0 : index
    %28 = vector.load %arg3[%c0_22, %c0_23] : memref<72x128xbf16, #tpu.memory_space<vmem>>, vector<24x128xbf16>
    %cst_24 = arith.constant dense<0.000000e+00> : vector<144x128xf32>
    %29 = tpu.matmul %27, %28, %cst_24 {dimension_numbers = #tpu.dot_dimension_numbers<[1], [0], [0], [1], [0, 0, 1, 1], [], []>} : vector<144x24xbf16>, vector<24x128xbf16>, vector<144x128xf32> -> vector<144x128xf32>
    %30 = arith.addf %25, %29 : vector<144x128xf32>
    %c0_25 = arith.constant 0 : index
    %c162 = arith.constant 162 : index
    %c0_26 = arith.constant 0 : index
    %31 = vector.load %arg2[%c0_25, %c162, %c0_26] : memref<1x324x24xbf16, #tpu.memory_space<vmem>>, vector<1x144x24xbf16>
    %32 = vector.shape_cast %31 : vector<1x144x24xbf16> to vector<144x24xbf16>
    %c24_27 = arith.constant 24 : index
    %c0_28 = arith.constant 0 : index
    %33 = vector.load %arg3[%c24_27, %c0_28] : memref<72x128xbf16, #tpu.memory_space<vmem>>, vector<24x128xbf16>
    %cst_29 = arith.constant dense<0.000000e+00> : vector<144x128xf32>
    %34 = tpu.matmul %32, %33, %cst_29 {dimension_numbers = #tpu.dot_dimension_numbers<[1], [0], [0], [1], [0, 0, 1, 1], [], []>} : vector<144x24xbf16>, vector<24x128xbf16>, vector<144x128xf32> -> vector<144x128xf32>
    %35 = arith.addf %30, %34 : vector<144x128xf32>
    %c0_30 = arith.constant 0 : index
    %c180 = arith.constant 180 : index
    %c0_31 = arith.constant 0 : index
    %36 = vector.load %arg2[%c0_30, %c180, %c0_31] : memref<1x324x24xbf16, #tpu.memory_space<vmem>>, vector<1x144x24xbf16>
    %37 = vector.shape_cast %36 : vector<1x144x24xbf16> to vector<144x24xbf16>
    %c48_32 = arith.constant 48 : index
    %c0_33 = arith.constant 0 : index
    %38 = vector.load %arg3[%c48_32, %c0_33] : memref<72x128xbf16, #tpu.memory_space<vmem>>, vector<24x128xbf16>
    %cst_34 = arith.constant dense<0.000000e+00> : vector<144x128xf32>
    %39 = tpu.matmul %37, %38, %cst_34 {dimension_numbers = #tpu.dot_dimension_numbers<[1], [0], [0], [1], [0, 0, 1, 1], [], []>} : vector<144x24xbf16>, vector<24x128xbf16>, vector<144x128xf32> -> vector<144x128xf32>
    %40 = arith.addf %35, %39 : vector<144x128xf32>
    %41 = vector.broadcast %0 : vector<1x128xf32> to vector<144x128xf32>
    %42 = arith.addf %40, %41 : vector<144x128xf32>
    %cst_35 = arith.constant 0.000000e+00 : f32
    %43 = vector.broadcast %cst_35 : f32 to vector<144x128xf32>
    %44 = arith.maximumf %42, %43 : vector<144x128xf32>
    %45 = arith.truncf %44 : vector<144x128xf32> to vector<144x128xbf16>
    %c0_36 = arith.constant 0 : index
    %c144_37 = arith.constant 144 : index
    %c0_38 = arith.constant 0 : index
    %46 = vector.load %arg5[%c0_36, %c144_37, %c0_38] : memref<1x288x128xbf16, #tpu.memory_space<vmem>>, vector<1x144x128xbf16>
    %47 = vector.shape_cast %46 : vector<1x144x128xbf16> to vector<144x128xbf16>
    %48 = vector.shape_cast %45 : vector<144x128xbf16> to vector<1x144x128xbf16>
    tpu.vector_store %arg5[%c0_36, %c144_37, %c0_38], %48 {strides = array<i32>} : memref<1x288x128xbf16, #tpu.memory_space<vmem>>, vector<1x144x128xbf16>,
    return
  }
  func.func @transform_0(%arg0: i32, %arg1: i32) -> (i32, i32, i32) {
    %c0_i32 = arith.constant 0 : i32
    %c0_i32_0 = arith.constant 0 : i32
    %c0_i32_1 = arith.constant 0 : i32
    return %arg1, %c0_i32, %c0_i32_0 : i32, i32, i32
  }
  func.func @transform_1(%arg0: i32, %arg1: i32) -> (i32, i32) {
    %c0_i32 = arith.constant 0 : i32
    %c0_i32_0 = arith.constant 0 : i32
    return %c0_i32, %arg0 : i32, i32
  }
  func.func @transform_2(%arg0: i32, %arg1: i32) -> (i32, i32) {
    %c0_i32 = arith.constant 0 : i32
    %c0_i32_0 = arith.constant 0 : i32
    return %c0_i32, %arg0 : i32, i32
  }
  func.func @transform_3(%arg0: i32, %arg1: i32) -> (i32, i32, i32) {
    %c0_i32 = arith.constant 0 : i32
    %c0_i32_0 = arith.constant 0 : i32
    return %arg1, %c0_i32, %arg0 : i32, i32, i32
  }
}

module attributes {stable_mosaic.version = 11 : i64} {
  func.func @_conv3x3_bn_kernel(%arg0: i32, %arg1: i32, %arg2: memref<1x324x48xbf16, #tpu.memory_space<vmem>>, %arg3: memref<144x128xbf16, #tpu.memory_space<vmem>>, %arg4: memref<1x128xf32, #tpu.memory_space<vmem>>, %arg5: memref<1x288x128xf32, #tpu.memory_space<vmem>>) attributes {dimension_semantics = [#tpu.dimension_semantics<parallel>, #tpu.dimension_semantics<parallel>], iteration_bounds = array<i64: 1, 2>, scalar_prefetch = 0 : i64, scratch_operands = 0 : i64, tpu.core_type = #tpu.core_type<tc>, window_params = [{transform_indices = @transform_0, window_bounds = array<i64: 1, 324, 48>}, {transform_indices = @transform_1, window_bounds = array<i64: 144, 128>}, {transform_indices = @transform_2, window_bounds = array<i64: 1, 128>}, {transform_indices = @transform_3, window_bounds = array<i64: 1, 288, 128>}]} {
    %c0 = arith.constant 0 : index
    %c0_0 = arith.constant 0 : index
    %0 = vector.load %arg4[%c0, %c0_0] : memref<1x128xf32, #tpu.memory_space<vmem>>, vector<1x128xf32>
    %cst = arith.constant 0.000000e+00 : f32
    %1 = vector.broadcast %cst : f32 to vector<144x128xf32>
    %c0_1 = arith.constant 0 : index
    %c0_2 = arith.constant 0 : index
    %c0_3 = arith.constant 0 : index
    %2 = vector.load %arg2[%c0_1, %c0_2, %c0_3] : memref<1x324x48xbf16, #tpu.memory_space<vmem>>, vector<1x144x48xbf16>
    %3 = vector.shape_cast %2 : vector<1x144x48xbf16> to vector<144x48xbf16>
    %c0_4 = arith.constant 0 : index
    %c0_5 = arith.constant 0 : index
    %4 = vector.load %arg3[%c0_4, %c0_5] : memref<144x128xbf16, #tpu.memory_space<vmem>>, vector<48x128xbf16>
    %cst_6 = arith.constant dense<0.000000e+00> : vector<144x128xf32>
    %5 = tpu.matmul %3, %4, %cst_6 {dimension_numbers = #tpu.dot_dimension_numbers<[1], [0], [0], [1], [0, 0, 1, 1], [], []>} : vector<144x48xbf16>, vector<48x128xbf16>, vector<144x128xf32> -> vector<144x128xf32>
    %6 = arith.addf %1, %5 : vector<144x128xf32>
    %c0_7 = arith.constant 0 : index
    %c18 = arith.constant 18 : index
    %c0_8 = arith.constant 0 : index
    %7 = vector.load %arg2[%c0_7, %c18, %c0_8] : memref<1x324x48xbf16, #tpu.memory_space<vmem>>, vector<1x144x48xbf16>
    %8 = vector.shape_cast %7 : vector<1x144x48xbf16> to vector<144x48xbf16>
    %c48 = arith.constant 48 : index
    %c0_9 = arith.constant 0 : index
    %9 = vector.load %arg3[%c48, %c0_9] : memref<144x128xbf16, #tpu.memory_space<vmem>>, vector<48x128xbf16>
    %cst_10 = arith.constant dense<0.000000e+00> : vector<144x128xf32>
    %10 = tpu.matmul %8, %9, %cst_10 {dimension_numbers = #tpu.dot_dimension_numbers<[1], [0], [0], [1], [0, 0, 1, 1], [], []>} : vector<144x48xbf16>, vector<48x128xbf16>, vector<144x128xf32> -> vector<144x128xf32>
    %11 = arith.addf %6, %10 : vector<144x128xf32>
    %c0_11 = arith.constant 0 : index
    %c36 = arith.constant 36 : index
    %c0_12 = arith.constant 0 : index
    %12 = vector.load %arg2[%c0_11, %c36, %c0_12] : memref<1x324x48xbf16, #tpu.memory_space<vmem>>, vector<1x144x48xbf16>
    %13 = vector.shape_cast %12 : vector<1x144x48xbf16> to vector<144x48xbf16>
    %c96 = arith.constant 96 : index
    %c0_13 = arith.constant 0 : index
    %14 = vector.load %arg3[%c96, %c0_13] : memref<144x128xbf16, #tpu.memory_space<vmem>>, vector<48x128xbf16>
    %cst_14 = arith.constant dense<0.000000e+00> : vector<144x128xf32>
    %15 = tpu.matmul %13, %14, %cst_14 {dimension_numbers = #tpu.dot_dimension_numbers<[1], [0], [0], [1], [0, 0, 1, 1], [], []>} : vector<144x48xbf16>, vector<48x128xbf16>, vector<144x128xf32> -> vector<144x128xf32>
    %16 = arith.addf %11, %15 : vector<144x128xf32>
    %17 = vector.broadcast %0 : vector<1x128xf32> to vector<144x128xf32>
    %18 = arith.addf %16, %17 : vector<144x128xf32>
    %c0_15 = arith.constant 0 : index
    %c0_16 = arith.constant 0 : index
    %c0_17 = arith.constant 0 : index
    %19 = vector.load %arg5[%c0_15, %c0_16, %c0_17] : memref<1x288x128xf32, #tpu.memory_space<vmem>>, vector<1x144x128xf32>
    %20 = vector.shape_cast %19 : vector<1x144x128xf32> to vector<144x128xf32>
    %21 = vector.shape_cast %18 : vector<144x128xf32> to vector<1x144x128xf32>
    tpu.vector_store %arg5[%c0_15, %c0_16, %c0_17], %21 {strides = array<i32>} : memref<1x288x128xf32, #tpu.memory_space<vmem>>, vector<1x144x128xf32>,
    %cst_18 = arith.constant 0.000000e+00 : f32
    %22 = vector.broadcast %cst_18 : f32 to vector<144x128xf32>
    %c0_19 = arith.constant 0 : index
    %c144 = arith.constant 144 : index
    %c0_20 = arith.constant 0 : index
    %23 = vector.load %arg2[%c0_19, %c144, %c0_20] : memref<1x324x48xbf16, #tpu.memory_space<vmem>>, vector<1x144x48xbf16>
    %24 = vector.shape_cast %23 : vector<1x144x48xbf16> to vector<144x48xbf16>
    %c0_21 = arith.constant 0 : index
    %c0_22 = arith.constant 0 : index
    %25 = vector.load %arg3[%c0_21, %c0_22] : memref<144x128xbf16, #tpu.memory_space<vmem>>, vector<48x128xbf16>
    %cst_23 = arith.constant dense<0.000000e+00> : vector<144x128xf32>
    %26 = tpu.matmul %24, %25, %cst_23 {dimension_numbers = #tpu.dot_dimension_numbers<[1], [0], [0], [1], [0, 0, 1, 1], [], []>} : vector<144x48xbf16>, vector<48x128xbf16>, vector<144x128xf32> -> vector<144x128xf32>
    %27 = arith.addf %22, %26 : vector<144x128xf32>
    %c0_24 = arith.constant 0 : index
    %c162 = arith.constant 162 : index
    %c0_25 = arith.constant 0 : index
    %28 = vector.load %arg2[%c0_24, %c162, %c0_25] : memref<1x324x48xbf16, #tpu.memory_space<vmem>>, vector<1x144x48xbf16>
    %29 = vector.shape_cast %28 : vector<1x144x48xbf16> to vector<144x48xbf16>
    %c48_26 = arith.constant 48 : index
    %c0_27 = arith.constant 0 : index
    %30 = vector.load %arg3[%c48_26, %c0_27] : memref<144x128xbf16, #tpu.memory_space<vmem>>, vector<48x128xbf16>
    %cst_28 = arith.constant dense<0.000000e+00> : vector<144x128xf32>
    %31 = tpu.matmul %29, %30, %cst_28 {dimension_numbers = #tpu.dot_dimension_numbers<[1], [0], [0], [1], [0, 0, 1, 1], [], []>} : vector<144x48xbf16>, vector<48x128xbf16>, vector<144x128xf32> -> vector<144x128xf32>
    %32 = arith.addf %27, %31 : vector<144x128xf32>
    %c0_29 = arith.constant 0 : index
    %c180 = arith.constant 180 : index
    %c0_30 = arith.constant 0 : index
    %33 = vector.load %arg2[%c0_29, %c180, %c0_30] : memref<1x324x48xbf16, #tpu.memory_space<vmem>>, vector<1x144x48xbf16>
    %34 = vector.shape_cast %33 : vector<1x144x48xbf16> to vector<144x48xbf16>
    %c96_31 = arith.constant 96 : index
    %c0_32 = arith.constant 0 : index
    %35 = vector.load %arg3[%c96_31, %c0_32] : memref<144x128xbf16, #tpu.memory_space<vmem>>, vector<48x128xbf16>
    %cst_33 = arith.constant dense<0.000000e+00> : vector<144x128xf32>
    %36 = tpu.matmul %34, %35, %cst_33 {dimension_numbers = #tpu.dot_dimension_numbers<[1], [0], [0], [1], [0, 0, 1, 1], [], []>} : vector<144x48xbf16>, vector<48x128xbf16>, vector<144x128xf32> -> vector<144x128xf32>
    %37 = arith.addf %32, %36 : vector<144x128xf32>
    %38 = vector.broadcast %0 : vector<1x128xf32> to vector<144x128xf32>
    %39 = arith.addf %37, %38 : vector<144x128xf32>
    %c0_34 = arith.constant 0 : index
    %c144_35 = arith.constant 144 : index
    %c0_36 = arith.constant 0 : index
    %40 = vector.load %arg5[%c0_34, %c144_35, %c0_36] : memref<1x288x128xf32, #tpu.memory_space<vmem>>, vector<1x144x128xf32>
    %41 = vector.shape_cast %40 : vector<1x144x128xf32> to vector<144x128xf32>
    %42 = vector.shape_cast %39 : vector<144x128xf32> to vector<1x144x128xf32>
    tpu.vector_store %arg5[%c0_34, %c144_35, %c0_36], %42 {strides = array<i32>} : memref<1x288x128xf32, #tpu.memory_space<vmem>>, vector<1x144x128xf32>,
    return
  }
  func.func @transform_0(%arg0: i32, %arg1: i32) -> (i32, i32, i32) {
    %c0_i32 = arith.constant 0 : i32
    %c0_i32_0 = arith.constant 0 : i32
    %c0_i32_1 = arith.constant 0 : i32
    return %arg1, %c0_i32, %c0_i32_0 : i32, i32, i32
  }
  func.func @transform_1(%arg0: i32, %arg1: i32) -> (i32, i32) {
    %c0_i32 = arith.constant 0 : i32
    %c0_i32_0 = arith.constant 0 : i32
    return %c0_i32, %arg0 : i32, i32
  }
  func.func @transform_2(%arg0: i32, %arg1: i32) -> (i32, i32) {
    %c0_i32 = arith.constant 0 : i32
    %c0_i32_0 = arith.constant 0 : i32
    return %c0_i32, %arg0 : i32, i32
  }
  func.func @transform_3(%arg0: i32, %arg1: i32) -> (i32, i32, i32) {
    %c0_i32 = arith.constant 0 : i32
    %c0_i32_0 = arith.constant 0 : i32
    return %arg1, %c0_i32, %arg0 : i32, i32, i32
  }
}

</mosaic_0001>

<bundles_post_ra>
// kernel: sha_res_block_forward.2
= control target key start
LH: loop header
LB: loop body
LE: loop exit
PB: predicated region body
PF: predicated region fallthrough
CT: control target
= control target key end

     0   :  { %s2612_s12 = smov 0   ;;  %s2614_s13 = smov 0   ;;  %s3150_s0 = inlined_call_operand.vmem [shape: bf16[2,324,24], index: 0, kind: input, shape index: {}]   ;;  %s3151_s1 = inlined_call_operand.vmem [shape: bf16[72,128], index: 1, kind: input, shape index: {}]   ;;  %s3152_s2 = inlined_call_operand.vmem [shape: f32[1,128], index: 2, kind: input, shape index: {}]   ;;  %s3153_s3 = inlined_call_operand.vmem [shape: bf16[2,288,128], index: 3, kind: output, shape index: {}]  }
   0x1   :  { %s2616_s14 = smov 0  }
   0x2 LB: > { %s22_s15 = sadd.s32 1, %s2584_s13  ;;  %p1881_p0 = scmp.ge.s32.totalorder %s2588_s14, 1  ;;  %s2588_s14 = sphi %s2616_s14, %s13_s14   ;;  %s2584_s13 = sphi %s2614_s13, %s3155_s13   ;;  %s2580_s12 = sphi %s2612_s12, %s3154_s12  }
   0x3   : > { %p23_p1 = scmp.ge.s32.totalorder %s22_s15, 2  ;;  %p168_p2 = scmp.lt.s32.totalorder %s2588_s14, 3 }
   0x5   : > { %s3157_s15 = smov (%p23_p1, %s22_s15), 0  ;;  %p169_p3 = pnand %p1881_p0, %p168_p2 }
   0x6   : > { %p202_p4 = scmp.lt.s32.totalorder (!%p169_p3), %s2580_s12, 1 }
   0x7   : > { %172 = sbr.rel (%p169_p3) target bundleno = 439 (0x1b7), region = 32 }
   0xc   : > { %vm357_vm0 = vcmask 1043456   ;;  %v2510_v0 = vld [vmem:[%s3151_s1 + $0x8] ss:$0 sps:$4 sm:$0xff]   ;;  %v2590_v1 = vmov 0.0   ;;  %v2511_v2 = vld [vmem:[%s3151_s1 + $0x14] ss:$0 sps:$4 sm:$0xff]  }
   0xd   : > { %2282 = vmatprep.subr.bf16.mxu1 %v2590_v1  ;;  %2242 = vmatprep.subr.bf16.mxu0 %v2590_v1  ;;  %v511_v3 = vsel %vm357_vm0, %v2510_v0, 0  ;;  %v359_v4 = vsel %vm357_vm0, %v2511_v2, 0  ;;  %v2512_v5 = vld [vmem:[%s3151_s1] sm:$0xff]   ;;  %v2513_v6 = vld [vmem:[%s3151_s1 + $0xc] sm:$0xff]   ;;  %vm2591_vm1 = vmmov 0   ;;  %s3159_s12 = smov (!%p202_p4, %s2580_s12), 1 }
   0xe   : > { %2283 = vmatpush3.bf16.msra.mxu1 %v511_v3  ;;  %2243 = vmatpush3.bf16.msra.mxu0 %v359_v4  ;;  %v2518_v7 = vld [vmem:[%s3151_s1 + $0x14] ss:$0 sps:$4 sm:$0xff]   ;;  %s2482_s26 = smul.u32 164, %s3159_s12  ;;  %vm329_vm2 = vcmask 195584   ;;  %v2517_v9 = vld [vmem:[%s3151_s1 + $0x20] ss:$0 sps:$4 sm:$0xff]  }
   0xf   : > { %2284 = vmatprep.subr.bf16.mxu1 %v2590_v1  ;;  %2244 = vmatprep.subr.bf16.mxu0 %v2590_v1  ;;  %v1134_v10 = vsel %vm357_vm0, %v2518_v7, 0  ;;  %v2525_v14 = vld [vmem:[%s3151_s1 + $0xc] sm:$0xff]   ;;  %vm300_vm3 = vcmask 1046528   ;;  %v745_v20 = vsel %vm357_vm0, %v2517_v9, 0  ;;  %v2524_v24 = vld [vmem:[%s3151_s1 + $0x18] sm:$0xff]   ;;  %vm688_vm4 = vcmask 1045504  }
  0x10   : > { %2286 = vmatprep.mubr.msk.bf16.mxu1 %vm2591_vm1, %v2590_v1  ;;  %2246 = vmatprep.mubr.msk.bf16.mxu0 %vm2591_vm1, %v2590_v1  ;;  %s2662_s29 = scalar_lea.vmem %s3150_s0, %s2482_s26  ;;  %v2535_v52 = vld [vmem:[%s3151_s1 + $0x20] ss:$0 sps:$4 sm:$0xff]   ;;  %v2534_v61 = vld [vmem:[%s3151_s1 + $0x8] ss:$0 sps:$4 sm:$0xff]   ;;  %v2546_v63 = vld [vmem:[%s3151_s1 + $0x18] sm:$0xff]   ;;  %s2483_s23 = smul.u32 144, %s3159_s12 }
  0x11   : > { %v2514_v8 = vld [vmem:[%s2662_s29] sm:$0xff]   ;;  %v227_v11 = vld [vmem:[%s2662_s29 + $0xc] sm:$0xf]  ;;  %v245_v12 = vld [vmem:[%s2662_s29 + $0x8] sm:$0xe]  ;;  %v1519_v58 = vsel %vm357_vm0, %v2535_v52, 0 }
  0x12   : > { %2285 = vmatpush3.bf16.msra.mxu1 %v2512_v5  ;;  %2245 = vmatpush3.bf16.msra.mxu0 %v2513_v6  ;;  %v2516_v13 = vld [vmem:[%s2662_s29 + $0x10] sm:$0xff]   ;;  %v1884_v15 = vcombine.low %v245_v12, %v227_v11  ;;  %v226_v16 = vld [vmem:[%s2662_s29 + $0x8] sm:$0xf]  ;;  %v2520_v19 = vld [vmem:[%s2662_s29 + $0x18] sm:$0xff]   ;;  %v1286_v3 = vsel %vm357_vm0, %v2534_v61, 0  ;;  %s3026_s26 = scalar_lea.vmem %s3153_s3, %s2483_s23 }
  0x13   : > { %2362 = vmatprep.subr.bf16.mxu1 %v2590_v1  ;;  %2322 = vmatprep.subr.bf16.mxu0 %v2590_v1  ;;  %v302_v17 = vrot.slane %v2516_v13, 1  ;;  %v1906_v21 = vcombine.low %v226_v16, %v227_v11  ;;  %v304_v23 = vrot.slane %v2520_v19, 1  ;;  %v2521_v26 = vld [vmem:[%s2662_s29 + $0x20] sm:$0xff]   ;;  %v2522_v29 = vld [vmem:[%s2662_s29 + $0x28] sm:$0xff]   ;;  %v2523_v32 = vld [vmem:[%s2662_s29 + $0x30] sm:$0xff]  }
  0x14   : > { %v301_v18 = vrot.slane %v1884_v15, 1  ;;  %v306_v27 = vrot.slane %v2521_v26, 1  ;;  %v308_v30 = vrot.slane %v2522_v29, 1  ;;  %v310_v33 = vrot.slane %v2523_v32, 1  ;;  %v2526_v34 = vld [vmem:[%s2662_s29 + $0x38] sm:$0xff]   ;;  %v2527_v38 = vld [vmem:[%s2662_s29 + $0x40] sm:$0xff]  }
  0x15   : > { %2287 = vmatmul.mubr.msk.bf16.vlgmr.msra.gmra.mxu1 %vm329_vm2, %v2514_v8  ;;  %v305_v25 = vsel %vm300_vm3, %v302_v17, %v304_v23  ;;  %v312_v36 = vrot.slane %v2526_v34, 1  ;;  %v314_v39 = vrot.slane %v2527_v38, 1  ;;  %v2528_v41 = vld [vmem:[%s2662_s29 + $0x48] sm:$0xff]   ;;  %v2745_v43 = vld [vmem:[%s2662_s29 + $0x54] sm:$0xf]  ;;  %v2752_v48 = vld [vmem:[%s2662_s29 + $0x58] sm:$0xff]  }
  0x16   : > { %2363 = vmatpush3.bf16.msra.mxu1 %v1134_v10  ;;  %2290 = vmatprep.mubr.msk.bf16.mxu1 %vm2591_vm1, %v2590_v1  ;;  %v303_v22 = vsel %vm300_vm3, %v301_v18, %v302_v17  ;;  %v307_v28 = vsel %vm300_vm3, %v304_v23, %v306_v27  ;;  %v309_v31 = vsel %vm300_vm3, %v306_v27, %v308_v30  ;;  %v316_v42 = vrot.slane %v2528_v41, 1  ;;  %v1023_v44 = vld [vmem:[%s2662_s29 + $0x50] sm:$0xe]  ;;  %v2529_v46 = vld [vmem:[%s2662_s29 + $0x50] ss:$0 sps:$4 sm:$0x11]  }
  0x17   : > { %2364 = vmatprep.subr.bf16.mxu1 %v2590_v1  ;;  %2247 = vmatmul.mubr.msk.bf16.vlgmr.msra.gmra.mxu0 %vm329_vm2, %v303_v22  ;;  %v311_v35 = vsel %vm300_vm3, %v308_v30, %v310_v33  ;;  %v313_v37 = vsel %vm300_vm3, %v310_v33, %v312_v36  ;;  %v315_v40 = vsel %vm300_vm3, %v312_v36, %v314_v39  ;;  %v318_v49 = vrot.slane %v2529_v46, 1  ;;  %v2532_v54 = vld [vmem:[%s2662_s29 + $0x10] sm:$0xfc]   ;;  %v2533_v55 = vld [vmem:[%s2662_s29 + $0x18] sm:$0xff]   ;;  %v2769_v57 = vld [vmem:[%s2662_s29 + $0x60] sm:$0xff]  }
  0x18   : > { %2323 = vmatpush3.bf16.msra.mxu0 %v745_v20  ;;  %2250 = vmatprep.mubr.msk.bf16.mxu0 %vm2591_vm1, %v2590_v1  ;;  %v317_v45 = vsel %vm300_vm3, %v314_v39, %v316_v42  ;;  %v1958_v47 = vcombine.low %v1023_v44, %v2745_v43  ;;  %v1079_v51 = vrot.slane %v2752_v48, 1  ;;  %v689_v59 = vrot.slane %v2532_v54, 2  ;;  %v2537_v2 = vld [vmem:[%s2662_s29 + $0x20] sm:$0xff]   ;;  %v2791_v5 = vld [vmem:[%s2662_s29 + $0x68] sm:$0xff]   ;;  %v2808_v12 = vld [vmem:[%s2662_s29 + $0x70] sm:$0xff]  }
  0x19   : > { %2324 = vmatprep.subr.bf16.mxu0 %v2590_v1  ;;  %v319_v53 = vsel %vm300_vm3, %v316_v42, %v318_v49  ;;  %v690_v60 = vrot.slane %v2533_v55, 2  ;;  %v1081_v62 = vrot.slane %v2769_v57, 1  ;;  %v692_v6 = vrot.slane %v2537_v2, 2  ;;  %v2544_v7 = vld [vmem:[%s3151_s1] sm:$0xff]   ;;  %v2539_v10 = vld [vmem:[%s2662_s29 + $0x28] sm:$0xff]   ;;  %v2541_v16 = vld [vmem:[%s2662_s29 + $0x30] sm:$0xff]  }
  0x1a   : > { %2365 = vmatpush3.bf16.msra.mxu1 %v2525_v14  ;;  %v1078_v50 = vrot.slane %v1958_v47, 1  ;;  %v1083_v8 = vrot.slane %v2791_v5, 1  ;;  %v1085_v14 = vrot.slane %v2808_v12, 1  ;;  %v2821_v18 = vld [vmem:[%s2662_s29 + $0x78] sm:$0xff]   ;;  %v2847_v30 = vld [vmem:[%s2662_s29 + $0x88] sm:$0xff]   ;;  %v2550_v36 = vld [vmem:[%s2662_s29 + $0x90] sm:$0xff]  }
  0x1b   : > { %2442 = vmatprep.subr.bf16.mxu1 %v2590_v1  ;;  %v691_v0 = vsel %vm688_vm4, %v689_v59, %v690_v60  ;;  %v1082_v4 = vsel %vm300_vm3, %v1079_v51, %v1081_v62  ;;  %v693_v9 = vsel %vm688_vm4, %v690_v60, %v692_v6  ;;  %v1087_v20 = vrot.slane %v2821_v18, 1  ;;  %v2543_v22 = vld [vmem:[%s2662_s29 + $0x38] sm:$0xff]   ;;  %v2556_v60 = vld [vmem:[%s2662_s29 + $0x48] sm:$0xff]  }
  0x1c   : > { %2325 = vmatpush3.bf16.msra.mxu0 %v2524_v24  ;;  %v1080_v56 = vsel %vm300_vm3, %v1078_v50, %v1079_v51  ;;  %v1084_v11 = vsel %vm300_vm3, %v1081_v62, %v1083_v8  ;;  %v1086_v17 = vsel %vm300_vm3, %v1083_v8, %v1085_v14  ;;  %v2834_v24 = vld [vmem:[%s2662_s29 + $0x80] sm:$0xff]   ;;  %v2552_v42 = vld [vmem:[%s2662_s29 + $0x98] ss:$0 sps:$4 sm:$0x11]   ;;  %v2554_v50 = vld [vmem:[%s2662_s29 + $0x58] sm:$0xfc]  }
  0x1d   : > { %2291 = vmatmul.mubr.msk.bf16.gmra.mxu1 %vm329_vm2, %v1906_v21  ;;  %2402 = vmatprep.subr.bf16.mxu0 %v2590_v1  ;;  %v1088_v23 = vsel %vm300_vm3, %v1085_v14, %v1087_v20  ;;  %v2553_v47 = vld [vmem:[%s2662_s29 + $0x58] ss:$0 sps:$4 sm:$0x33]   ;;  %v2555_v51 = vld [vmem:[%s2662_s29 + $0x60] sm:$0xff]   ;;  %v2559_v62 = vld [vmem:[%s2662_s29 + $0x70] sm:$0xff]  }
  0x1e   : > { %2294 = vmatprep.mubr.msk.bf16.mxu1 %vm2591_vm1, %v2590_v1  ;;  %v706_v52 = vrot.slane %v2553_v47, 2  ;;  %v1464_v54 = vrot.slane %v2555_v51, 2  ;;  %v2561_v8 = vld [vmem:[%s2662_s29 + $0x80] sm:$0xff]  }
  0x1f   : > { %2251 = vmatmul.mubr.msk.bf16.gmra.mxu0 %vm329_vm2, %v305_v25  ;;  %v698_v25 = vrot.slane %v2543_v22, 2 }
  0x20   : > { %2254 = vmatprep.mubr.msk.bf16.mxu0 %vm2591_vm1, %v2590_v1 }
  0x25   : > { %2295 = vmatmul.mubr.msk.bf16.gmra.mxu1 %vm329_vm2, %v2516_v13  ;;  %v694_v13 = vrot.slane %v2539_v10, 2  ;;  %v2562_v10 = vld [vmem:[%s2662_s29 + $0x88] sm:$0xff]  }
  0x26   : > { %2298 = vmatprep.mubr.msk.bf16.mxu1 %vm2591_vm1, %v2590_v1 }
  0x27   : > { %2255 = vmatmul.mubr.msk.bf16.gmra.mxu0 %vm329_vm2, %v307_v28  ;;  %v695_v15 = vsel %vm688_vm4, %v692_v6, %v694_v13  ;;  %v2547_v28 = vld [vmem:[%s2662_s29 + $0x40] sm:$0xff]  }
  0x28   : > { %2258 = vmatprep.mubr.msk.bf16.mxu0 %vm2591_vm1, %v2590_v1 }
  0x2d   : > { %2299 = vmatmul.mubr.msk.bf16.gmra.mxu1 %vm329_vm2, %v2520_v19  ;;  %v696_v19 = vrot.slane %v2541_v16, 2 }
  0x2e   : > { %2302 = vmatprep.mubr.msk.bf16.mxu1 %vm2591_vm1, %v2590_v1 }
  0x2f   : > { %2259 = vmatmul.mubr.msk.bf16.gmra.mxu0 %vm329_vm2, %v309_v31  ;;  %v697_v21 = vsel %vm688_vm4, %v694_v13, %v696_v19  ;;  %v699_v27 = vsel %vm688_vm4, %v696_v19, %v698_v25  ;;  %v700_v31 = vrot.slane %v2547_v28, 2  ;;  %v2563_v13 = vld [vmem:[%s2662_s29 + $0x90] sm:$0xff]  }
  0x30   : > { %2262 = vmatprep.mubr.msk.bf16.mxu0 %vm2591_vm1, %v2590_v1 }
  0x31   : > { %v701_v33 = vsel %vm688_vm4, %v698_v25, %v700_v31 }
  0x35   : > { %2303 = vmatmul.mubr.msk.bf16.gmra.mxu1 %vm329_vm2, %v2521_v26  ;;  %v1089_v26 = vrot.slane %v2834_v24, 1 }
  0x36   : > { %2306 = vmatprep.mubr.msk.bf16.mxu1 %vm2591_vm1, %v2590_v1 }
  0x37   : > { %2263 = vmatmul.mubr.msk.bf16.gmra.mxu0 %vm329_vm2, %v311_v35 }
  0x38   : > { %2266 = vmatprep.mubr.msk.bf16.mxu0 %vm2591_vm1, %v2590_v1 }
  0x3d   : > { %2307 = vmatmul.mubr.msk.bf16.gmra.mxu1 %vm329_vm2, %v2522_v29  ;;  %v1090_v29 = vsel %vm300_vm3, %v1087_v20, %v1089_v26 }
  0x3e   : > { %2310 = vmatprep.mubr.msk.bf16.mxu1 %vm2591_vm1, %v2590_v1 }
  0x3f   : > { %2267 = vmatmul.mubr.msk.bf16.gmra.mxu0 %vm329_vm2, %v313_v37 }
  0x40   : > { %2270 = vmatprep.mubr.msk.bf16.mxu0 %vm2591_vm1, %v2590_v1 }
  0x45   : > { %2311 = vmatmul.mubr.msk.bf16.gmra.mxu1 %vm329_vm2, %v2523_v32  ;;  %v1091_v32 = vrot.slane %v2847_v30, 1 }
  0x46   : > { %2314 = vmatprep.mubr.msk.bf16.mxu1 %vm2591_vm1, %v2590_v1 }
  0x47   : > { %2271 = vmatmul.mubr.msk.bf16.gmra.mxu0 %vm329_vm2, %v315_v40  ;;  %v1092_v35 = vsel %vm300_vm3, %v1089_v26, %v1091_v32  ;;  %v2551_v40 = vld [vmem:[%s2662_s29 + $0x50] sm:$0xff]  }
  0x48   : > { %2274 = vmatprep.mubr.msk.bf16.mxu0 %vm2591_vm1, %v2590_v1  ;;  %v704_v44 = vrot.slane %v2551_v40, 2 }
  0x4a   : > { %v707_v55 = vsel %vm688_vm4, %v704_v44, %v706_v52 }
  0x4d   : > { %2315 = vmatmul.mubr.msk.bf16.gmra.mxu1 %vm329_vm2, %v2526_v34  ;;  %v2549_v34 = vld [vmem:[%s2662_s29 + $0x48] sm:$0xff]  }
  0x4e   : > { %2318 = vmatprep.mubr.msk.bf16.mxu1 %vm2591_vm1, %v2590_v1  ;;  %v702_v37 = vrot.slane %v2549_v34, 2 }
  0x4f   : > { %2275 = vmatmul.mubr.msk.bf16.gmra.mxu0 %vm329_vm2, %v317_v45  ;;  %v1095_v45 = vrot.slane %v2552_v42, 1 }
  0x50   : > { %2278 = vmatprep.mubr.msk.bf16.mxu0 %vm2591_vm1, %v2590_v1  ;;  %v703_v39 = vsel %vm688_vm4, %v700_v31, %v702_v37  ;;  %v705_v46 = vsel %vm688_vm4, %v702_v37, %v704_v44 }
  0x55   : > { %2319 = vmatmul.mubr.msk.bf16.gmra.mxu1 %vm329_vm2, %v2527_v38  ;;  %v1093_v38 = vrot.slane %v2550_v36, 1 }
  0x56   : > { %2366 = vmatprep.mubr.msk.bf16.mxu1 %vm2591_vm1, %v2590_v1 }
  0x57   : > { %2279 = vmatmul.mubr.msk.bf16.gmra.mxu0 %vm329_vm2, %v319_v53  ;;  %v1094_v41 = vsel %vm300_vm3, %v1091_v32, %v1093_v38  ;;  %v1096_v49 = vsel %vm300_vm3, %v1093_v38, %v1095_v45  ;;  %v1463_v53 = vrot.slane %v2554_v50, 2 }
  0x58   : > { %2326 = vmatprep.mubr.msk.bf16.mxu0 %vm2591_vm1, %v2590_v1 }
  0x5d   : > { %2367 = vmatmul.mubr.msk.bf16.vlgmr.msra.gmra.mxu1 %vm329_vm2, %v1080_v56  ;;  %v1465_v56 = vsel %vm688_vm4, %v1463_v53, %v1464_v54 }
  0x5e   : > { %2443 = vmatpush3.bf16.msra.mxu1 %v1519_v58  ;;  %2370 = vmatprep.mubr.msk.bf16.mxu1 %vm2591_vm1, %v2590_v1  ;;  %v2557_v58 = vld [vmem:[%s2662_s29 + $0x68] sm:$0xff]  }
  0x5f   : > { %2444 = vmatprep.subr.bf16.mxu1 %v2590_v1  ;;  %2327 = vmatmul.mubr.msk.bf16.vlgmr.msra.gmra.mxu0 %vm329_vm2, %v691_v0  ;;  %v1466_v59 = vrot.slane %v2557_v58, 2  ;;  %v1468_v0 = vrot.slane %v2559_v62, 2 }
  0x60   : > { %2403 = vmatpush3.bf16.msra.mxu0 %v1286_v3  ;;  %2330 = vmatprep.mubr.msk.bf16.mxu0 %vm2591_vm1, %v2590_v1 }
  0x61   : > { %2404 = vmatprep.subr.bf16.mxu0 %v2590_v1  ;;  %v1467_v61 = vsel %vm688_vm4, %v1464_v54, %v1466_v59  ;;  %v1469_v3 = vsel %vm688_vm4, %v1466_v59, %v1468_v0 }
  0x62   : > { %2445 = vmatpush3.bf16.msra.mxu1 %v2546_v63  ;;  %v1004_v63 = vld [vmem:[%s2662_s29 + $0x50] sm:$0xf] }
  0x63   : > { %v1980_v2 = vcombine.low %v1004_v63, %v2745_v43  ;;  %v1472_v43 = vrot.slane %v2561_v8, 2 }
  0x64   : > { %2405 = vmatpush3.bf16.msra.mxu0 %v2544_v7 }
  0x65   : > { %2371 = vmatmul.mubr.msk.bf16.gmra.mxu1 %vm329_vm2, %v1082_v4  ;;  %v2560_v4 = vld [vmem:[%s2662_s29 + $0x78] sm:$0xff]  }
  0x66   : > { %2374 = vmatprep.mubr.msk.bf16.mxu1 %vm2591_vm1, %v2590_v1  ;;  %v1470_v6 = vrot.slane %v2560_v4, 2 }
  0x67   : > { %2331 = vmatmul.mubr.msk.bf16.gmra.mxu0 %vm329_vm2, %v693_v9 }
  0x68   : > { %2334 = vmatprep.mubr.msk.bf16.mxu0 %vm2591_vm1, %v2590_v1  ;;  %v1471_v7 = vsel %vm688_vm4, %v1468_v0, %v1470_v6  ;;  %v1473_v9 = vsel %vm688_vm4, %v1470_v6, %v1472_v43 }
  0x6d   : > { %2375 = vmatmul.mubr.msk.bf16.gmra.mxu1 %vm329_vm2, %v1084_v11 }
  0x6e   : > { %2378 = vmatprep.mubr.msk.bf16.mxu1 %vm2591_vm1, %v2590_v1 }
  0x6f   : > { %2335 = vmatmul.mubr.msk.bf16.gmra.mxu0 %vm329_vm2, %v695_v15  ;;  %v2564_v15 = vld [vmem:[%s2662_s29 + $0x98] sm:$0xff]  }
  0x70   : > { %2338 = vmatprep.mubr.msk.bf16.mxu0 %vm2591_vm1, %v2590_v1  ;;  %v1478_v16 = vrot.slane %v2564_v15, 2 }
  0x75   : > { %2379 = vmatmul.mubr.msk.bf16.gmra.mxu1 %vm329_vm2, %v1086_v17 }
  0x76   : > { %2382 = vmatprep.mubr.msk.bf16.mxu1 %vm2591_vm1, %v2590_v1 }
  0x77   : > { %2339 = vmatmul.mubr.msk.bf16.gmra.mxu0 %vm329_vm2, %v697_v21  ;;  %v2565_v21 = vld [vmem:[%s2662_s29 + $0xa0] ss:$0 sps:$4 sm:$0x33]  }
  0x78   : > { %2342 = vmatprep.mubr.msk.bf16.mxu0 %vm2591_vm1, %v2590_v1 }
  0x7d   : > { %2383 = vmatmul.mubr.msk.bf16.gmra.mxu1 %vm329_vm2, %v1088_v23 }
  0x7e   : > { %2386 = vmatprep.mubr.msk.bf16.mxu1 %vm2591_vm1, %v2590_v1 }
  0x7f   : > { %2343 = vmatmul.mubr.msk.bf16.gmra.mxu0 %vm329_vm2, %v699_v27  ;;  %v1480_v27 = vrot.slane %v2565_v21, 2 }
  0x80   : > { %2346 = vmatprep.mubr.msk.bf16.mxu0 %vm2591_vm1, %v2590_v1 }
  0x85   : > { %2387 = vmatmul.mubr.msk.bf16.gmra.mxu1 %vm329_vm2, %v1090_v29 }
  0x86   : > { %2390 = vmatprep.mubr.msk.bf16.mxu1 %vm2591_vm1, %v2590_v1 }
  0x87   : > { %2347 = vmatmul.mubr.msk.bf16.gmra.mxu0 %vm329_vm2, %v701_v33  ;;  %v1481_v33 = vsel %vm688_vm4, %v1478_v16, %v1480_v27 }
  0x88   : > { %2350 = vmatprep.mubr.msk.bf16.mxu0 %vm2591_vm1, %v2590_v1 }
  0x8d   : > { %2391 = vmatmul.mubr.msk.bf16.gmra.mxu1 %vm329_vm2, %v1092_v35 }
  0x8e   : > { %2394 = vmatprep.mubr.msk.bf16.mxu1 %vm2591_vm1, %v2590_v1 }
  0x8f   : > { %2351 = vmatmul.mubr.msk.bf16.gmra.mxu0 %vm329_vm2, %v703_v39 }
  0x90   : > { %2354 = vmatprep.mubr.msk.bf16.mxu0 %vm2591_vm1, %v2590_v1 }
  0x95   : > { %2395 = vmatmul.mubr.msk.bf16.gmra.mxu1 %vm329_vm2, %v1094_v41 }
  0x96   : > { %2398 = vmatprep.mubr.msk.bf16.mxu1 %vm2591_vm1, %v2590_v1 }
  0x97   : > { %2355 = vmatmul.mubr.msk.bf16.gmra.mxu0 %vm329_vm2, %v705_v46 }
  0x98   : > { %2358 = vmatprep.mubr.msk.bf16.mxu0 %vm2591_vm1, %v2590_v1 }
  0x9d   : > { %2399 = vmatmul.mubr.msk.bf16.gmra.mxu1 %vm329_vm2, %v1096_v49 }
  0x9e   : > { %2446 = vmatprep.mubr.msk.bf16.mxu1 %vm2591_vm1, %v2590_v1 }
  0x9f   : > { %2359 = vmatmul.mubr.msk.bf16.gmra.mxu0 %vm329_vm2, %v707_v55 }
  0xa0   : > { %2406 = vmatprep.mubr.msk.bf16.mxu0 %vm2591_vm1, %v2590_v1 }
  0xa5   : > { %2447 = vmatmul.mubr.msk.bf16.vlgmr.msra.gmra.mxu1 %vm329_vm2, %v1465_v56 }
  0xa6   : > { %2450 = vmatprep.mubr.msk.bf16.mxu1 %vm2591_vm1, %v2590_v1 }
  0xa7   : > { %2407 = vmatmul.mubr.msk.bf16.vlgmr.msra.gmra.mxu0 %vm329_vm2, %v2556_v60 }
  0xa8   : > { %2410 = vmatprep.mubr.msk.bf16.mxu0 %vm2591_vm1, %v2590_v1 }
  0xad   : > { %2451 = vmatmul.mubr.msk.bf16.gmra.mxu1 %vm329_vm2, %v1467_v61 }
  0xae   : > { %2454 = vmatprep.mubr.msk.bf16.mxu1 %vm2591_vm1, %v2590_v1 }
  0xaf   : > { %2411 = vmatmul.mubr.msk.bf16.gmra.mxu0 %vm329_vm2, %v1980_v2 }
  0xb0   : > { %2414 = vmatprep.mubr.msk.bf16.mxu0 %vm2591_vm1, %v2590_v1 }
  0xb5   : > { %2455 = vmatmul.mubr.msk.bf16.gmra.mxu1 %vm329_vm2, %v1469_v3 }
  0xb6   : > { %2458 = vmatprep.mubr.msk.bf16.mxu1 %vm2591_vm1, %v2590_v1 }
  0xb7   : > { %2415 = vmatmul.mubr.msk.bf16.gmra.mxu0 %vm329_vm2, %v2752_v48  ;;  %v1474_v48 = vrot.slane %v2562_v10, 2 }
  0xb8   : > { %2418 = vmatprep.mubr.msk.bf16.mxu0 %vm2591_vm1, %v2590_v1 }
  0xb9   : > { %v1475_v11 = vsel %vm688_vm4, %v1472_v43, %v1474_v48 }
  0xbd   : > { %2459 = vmatmul.mubr.msk.bf16.gmra.mxu1 %vm329_vm2, %v1471_v7 }
  0xbe   : > { %2462 = vmatprep.mubr.msk.bf16.mxu1 %vm2591_vm1, %v2590_v1 }
  0xbf   : > { %2419 = vmatmul.mubr.msk.bf16.gmra.mxu0 %vm329_vm2, %v2769_v57  ;;  %v1476_v57 = vrot.slane %v2563_v13, 2 }
  0xc0   : > { %2422 = vmatprep.mubr.msk.bf16.mxu0 %vm2591_vm1, %v2590_v1 }
  0xc1   : > { %v1477_v14 = vsel %vm688_vm4, %v1474_v48, %v1476_v57  ;;  %v1479_v20 = vsel %vm688_vm4, %v1476_v57, %v1478_v16 }
  0xc5   : > { %2463 = vmatmul.mubr.msk.bf16.gmra.mxu1 %vm329_vm2, %v1473_v9 }
  0xc6   : > { %2466 = vmatprep.mubr.msk.bf16.mxu1 %vm2591_vm1, %v2590_v1 }
  0xc7   : > { %2423 = vmatmul.mubr.msk.bf16.gmra.mxu0 %vm329_vm2, %v2791_v5 }
  0xc8   : > { %2426 = vmatprep.mubr.msk.bf16.mxu0 %vm2591_vm1, %v2590_v1 }
  0xcd   : > { %2467 = vmatmul.mubr.msk.bf16.gmra.mxu1 %vm329_vm2, %v1475_v11 }
  0xce   : > { %2470 = vmatprep.mubr.msk.bf16.mxu1 %vm2591_vm1, %v2590_v1 }
  0xcf   : > { %2427 = vmatmul.mubr.msk.bf16.gmra.mxu0 %vm329_vm2, %v2808_v12 }
  0xd0   : > { %2430 = vmatprep.mubr.msk.bf16.mxu0 %vm2591_vm1, %v2590_v1 }
  0xd5   : > { %v547_v5 = vpop.f32.mrf.mxu1  ;;  %2471 = vmatmul.mubr.msk.bf16.gmra.mxu1 %vm329_vm2, %v1477_v14 }
  0xd6   : > { %2474 = vmatprep.mubr.msk.bf16.mxu1 %vm2591_vm1, %v2590_v1 }
  0xd7   : > { %v2288_v17 = vpop.f32.mrf.mxu1  ;;  %v395_v22 = vpop.f32.mrf.mxu0  ;;  %2431 = vmatmul.mubr.msk.bf16.gmra.mxu0 %vm329_vm2, %v2821_v18 }
  0xd8   : > { %v2955_v23 = vadd.f32 %v547_v5, %v395_v22  ;;  %2434 = vmatprep.mubr.msk.bf16.mxu0 %vm2591_vm1, %v2590_v1 }
  0xd9   : > { %v550_v19 = vpop.f32.mrf.mxu1  ;;  %v2248_v25 = vpop.f32.mrf.mxu0 }
  0xdb   : > { %v2289_v12 = vpop.f32.mrf.mxu1  ;;  %v398_v28 = vpop.f32.mrf.mxu0 }
  0xdc   : > { %v2962_v31 = vadd.f32 %v550_v19, %v398_v28 }
  0xdd   : > { %v555_v26 = vpop.f32.mrf.mxu1  ;;  %2475 = vmatmul.mubr.msk.bf16.gmra.mxu1 %vm329_vm2, %v1479_v20  ;;  %v2249_v32 = vpop.f32.mrf.mxu0 }
  0xde   : > { %2478 = vmatprep.mubr.msk.bf16.mxu1 %vm2591_vm1, %v2590_v1 }
  0xdf   : > { %v2292_v29 = vpop.f32.mrf.mxu1  ;;  %v403_v34 = vpop.f32.mrf.mxu0  ;;  %2435 = vmatmul.mubr.msk.bf16.gmra.mxu0 %vm329_vm2, %v2834_v24 }
  0xe0   : > { %v2967_v36 = vadd.f32 %v555_v26, %v403_v34  ;;  %2438 = vmatprep.mubr.msk.bf16.mxu0 %vm2591_vm1, %v2590_v1 }
  0xe1   : > { %v558_v18 = vpop.f32.mrf.mxu1  ;;  %v2252_v37 = vpop.f32.mrf.mxu0 }
  0xe3   : > { %v2293_v35 = vpop.f32.mrf.mxu1  ;;  %v406_v39 = vpop.f32.mrf.mxu0 }
  0xe4   : > { %v2972_v41 = vadd.f32 %v558_v18, %v406_v39 }
  0xe5   : > { %v563_v38 = vpop.f32.mrf.mxu1  ;;  %2479 = vmatmul.mubr.msk.bf16.gmra.mxu1 %vm329_vm2, %v1481_v33  ;;  %v2253_v42 = vpop.f32.mrf.mxu0 }
  0xe7   : > { %v2296_v40 = vpop.f32.mrf.mxu1  ;;  %v411_v45 = vpop.f32.mrf.mxu0  ;;  %2439 = vmatmul.mubr.msk.bf16.gmra.mxu0 %vm329_vm2, %v2847_v30 }
  0xe8   : > { %v2976_v46 = vadd.f32 %v563_v38, %v411_v45 }
  0xe9   : > { %v566_v44 = vpop.f32.mrf.mxu1  ;;  %v2256_v47 = vpop.f32.mrf.mxu0 }
  0xeb   : > { %v2297_v24 = vpop.f32.mrf.mxu1  ;;  %v414_v1 = vpop.f32.mrf.mxu0 }
  0xec   : > { %v2978_v51 = vadd.f32 %v566_v44, %v414_v1 }
  0xed   : > { %v571_v49 = vpop.f32.mrf.mxu1  ;;  %v2257_v52 = vpop.f32.mrf.mxu0 }
  0xef   : > { %v2300_v50 = vpop.f32.mrf.mxu1  ;;  %v419_v54 = vpop.f32.mrf.mxu0 }
  0xf0   : > { %v2980_v56 = vadd.f32 %v571_v49, %v419_v54 }
  0xf1   : > { %v574_v53 = vpop.f32.mrf.mxu1  ;;  %v2260_v58 = vpop.f32.mrf.mxu0 }
  0xf3   : > { %v2301_v55 = vpop.f32.mrf.mxu1  ;;  %v422_v60 = vpop.f32.mrf.mxu0 }
  0xf4   : > { %v2982_v30 = vadd.f32 %v574_v53, %v422_v60 }
  0xf5   : > { %v579_v59 = vpop.f32.mrf.mxu1  ;;  %v2261_v62 = vpop.f32.mrf.mxu0 }
  0xf7   : > { %v2304_v61 = vpop.f32.mrf.mxu1  ;;  %v427_v0 = vpop.f32.mrf.mxu0 }
  0xf8   : > { %v2984_v3 = vadd.f32 %v579_v59, %v427_v0  ;;  %v3012_v61 = vld [vmem:[%s3152_s2] ss:$0 sm:$0xff] }
  0xf9   : > { %v582_v63 = vpop.f32.mrf.mxu1  ;;  %v2264_v4 = vpop.f32.mrf.mxu0 }
  0xfb   : > { %v2305_v2 = vpop.f32.mrf.mxu1  ;;  %v430_v7 = vpop.f32.mrf.mxu0 }
  0xfc   : > { %v2986_v43 = vadd.f32 %v582_v63, %v430_v7 }
  0xfd   : > { %v587_v6 = vpop.f32.mrf.mxu1  ;;  %v2265_v9 = vpop.f32.mrf.mxu0 }
  0xff   : > { %v2308_v8 = vpop.f32.mrf.mxu1  ;;  %v435_v48 = vpop.f32.mrf.mxu0 }
 0x100   : > { %v2988_v13 = vadd.f32 %v587_v6, %v435_v48 }
 0x101   : > { %v590_v10 = vpop.f32.mrf.mxu1  ;;  %v2268_v57 = vpop.f32.mrf.mxu0 }
 0x103   : > { %v2309_v11 = vpop.f32.mrf.mxu1  ;;  %v438_v15 = vpop.f32.mrf.mxu0 }
 0x104   : > { %v2990_v16 = vadd.f32 %v590_v10, %v438_v15 }
 0x105   : > { %v595_v14 = vpop.f32.mrf.mxu1  ;;  %v2269_v17 = vpop.f32.mrf.mxu0 }
 0x107   : > { %v2312_v5 = vpop.f32.mrf.mxu1  ;;  %v443_v20 = vpop.f32.mrf.mxu0 }
 0x108   : > { %v2992_v22 = vadd.f32 %v595_v14, %v443_v20 }
 0x109   : > { %v598_v19 = vpop.f32.mrf.mxu1  ;;  %v2272_v12 = vpop.f32.mrf.mxu0 }
 0x10b   : > { %v2313_v21 = vpop.f32.mrf.mxu1  ;;  %v446_v26 = vpop.f32.mrf.mxu0 }
 0x10c   : > { %v2994_v28 = vadd.f32 %v598_v19, %v446_v26 }
 0x10d   : > { %v603_v25 = vpop.f32.mrf.mxu1  ;;  %v2273_v29 = vpop.f32.mrf.mxu0 }
 0x10f   : > { %v2316_v27 = vpop.f32.mrf.mxu1  ;;  %v451_v18 = vpop.f32.mrf.mxu0 }
 0x110   : > { %v2996_v34 = vadd.f32 %v603_v25, %v451_v18 }
 0x111   : > { %v606_v32 = vpop.f32.mrf.mxu1  ;;  %v2276_v35 = vpop.f32.mrf.mxu0 }
 0x113   : > { %v2317_v33 = vpop.f32.mrf.mxu1  ;;  %v454_v38 = vpop.f32.mrf.mxu0 }
 0x114   : > { %v2998_v40 = vadd.f32 %v606_v32, %v454_v38 }
 0x115   : > { %v611_v37 = vpop.f32.mrf.mxu1  ;;  %v2277_v42 = vpop.f32.mrf.mxu0 }
 0x117   : > { %v2320_v39 = vpop.f32.mrf.mxu1  ;;  %v459_v45 = vpop.f32.mrf.mxu0 }
 0x118   : > { %v3000_v47 = vadd.f32 %v611_v37, %v459_v45 }
 0x119   : > { %v614_v44 = vpop.f32.mrf.mxu1  ;;  %v2280_v49 = vpop.f32.mrf.mxu0 }
 0x11b   : > { %v2321_v24 = vpop.f32.mrf.mxu1  ;;  %v462_v50 = vpop.f32.mrf.mxu0 }
 0x11c   : > { %v3004_v53 = vadd.f32 %v614_v44, %v462_v50 }
 0x11d   : > { %v3002_v1 = vpop.f32.mrf.mxu1  ;;  %v2281_v54 = vpop.f32.mrf.mxu0 }
 0x11f   : > { %v2368_v52 = vpop.f32.mrf.mxu1  ;;  %v781_v58 = vpop.f32.mrf.mxu0 }
 0x120   : > { %v852_v60 = vadd.f32 %v781_v58, %v2955_v23 }
 0x121   : > { %v3006_v55 = vpop.f32.mrf.mxu1  ;;  %v2328_v62 = vpop.f32.mrf.mxu0 }
 0x122   : > { %v876_v4 = vadd.f32 %v3012_v61, %v852_v60 }
 0x123   : > { %v2369_v59 = vpop.f32.mrf.mxu1  ;;  %v784_v0 = vpop.f32.mrf.mxu0 }
 0x124   : > { %v853_v6 = vadd.f32 %v784_v0, %v2962_v31  ;;  %v894_v48 = vmax.f32 %v876_v4, 0.0 }
 0x125   : > { %v3014_v63 = vpop.f32.mrf.mxu1  ;;  %v2329_v7 = vpop.f32.mrf.mxu0 }
 0x126   : > { %v877_v23 = vadd.f32 %v3012_v61, %v853_v6 }
 0x127   : > { %v2372_v2 = vpop.f32.mrf.mxu1  ;;  %v789_v9 = vpop.f32.mrf.mxu0 }
 0x128   : > { %v895_v11 = vmax.f32 %v877_v23, 0.0  ;;  %v854_v57 = vadd.f32 %v789_v9, %v2967_v36 }
 0x129   : > { %v3019_v8 = vpop.f32.mrf.mxu1  ;;  %v2332_v14 = vpop.f32.mrf.mxu0 }
 0x12a   : > { %v2072_v15 = vpack.c.bf16 %v895_v11, %v894_v48  ;;  %v878_v19 = vadd.f32 %v3012_v61, %v854_v57 }
 0x12b   : > { %v2373_v10 = vpop.f32.mrf.mxu1  ;;  %v792_v5 = vpop.f32.mrf.mxu0 }
 0x12c   : > { %2073 = vst [vmem:[%s3026_s26] sm:$0xff] %v2072_v15   ;;  %v855_v20 = vadd.f32 %v792_v5, %v2972_v41  ;;  %v896_v27 = vmax.f32 %v878_v19, 0.0 }
 0x12d   : > { %v3028_v31 = vpop.f32.mrf.mxu1  ;;  %v2333_v21 = vpop.f32.mrf.mxu0 }
 0x12e   : > { %v879_v12 = vadd.f32 %v3012_v61, %v855_v20 }
 0x12f   : > { %v2376_v17 = vpop.f32.mrf.mxu1  ;;  %v797_v25 = vpop.f32.mrf.mxu0 }
 0x130   : > { %v897_v29 = vmax.f32 %v879_v12, 0.0  ;;  %v856_v32 = vadd.f32 %v797_v25, %v2976_v46 }
 0x131   : > { %v3033_v36 = vpop.f32.mrf.mxu1  ;;  %v2336_v18 = vpop.f32.mrf.mxu0 }
 0x132   : > { %v2077_v35 = vpack.c.bf16 %v897_v29, %v896_v27  ;;  %v880_v41 = vadd.f32 %v3012_v61, %v856_v32 }
 0x133   : > { %v2377_v26 = vpop.f32.mrf.mxu1  ;;  %v800_v37 = vpop.f32.mrf.mxu0 }
 0x134   : > { %2159 = vst [vmem:[%s3026_s26 + $0x8] sm:$0xff] %v2077_v35   ;;  %v857_v39 = vadd.f32 %v800_v37, %v2978_v51  ;;  %v898_v46 = vmax.f32 %v880_v41, 0.0 }
 0x135   : > { %v3037_v33 = vpop.f32.mrf.mxu1  ;;  %v2337_v42 = vpop.f32.mrf.mxu0 }
 0x136   : > { %v881_v45 = vadd.f32 %v3012_v61, %v857_v39 }
 0x137   : > { %v2380_v38 = vpop.f32.mrf.mxu1  ;;  %v805_v24 = vpop.f32.mrf.mxu0 }
 0x138   : > { %v899_v50 = vmax.f32 %v881_v45, 0.0  ;;  %v858_v52 = vadd.f32 %v805_v24, %v2980_v56 }
 0x139   : > { %v3042_v44 = vpop.f32.mrf.mxu1  ;;  %v2340_v54 = vpop.f32.mrf.mxu0 }
 0x13a   : > { %v2082_v59 = vpack.c.bf16 %v899_v50, %v898_v46  ;;  %v882_v51 = vadd.f32 %v3012_v61, %v858_v52 }
 0x13b   : > { %v2381_v49 = vpop.f32.mrf.mxu1  ;;  %v808_v60 = vpop.f32.mrf.mxu0 }
 0x13c   : > { %2160 = vst [vmem:[%s3026_s26 + $0x10] sm:$0xff] %v2082_v59   ;;  %v859_v0 = vadd.f32 %v808_v60, %v2982_v30  ;;  %v900_v56 = vmax.f32 %v882_v51, 0.0 }
 0x13d   : > { %v3046_v58 = vpop.f32.mrf.mxu1  ;;  %v2341_v2 = vpop.f32.mrf.mxu0 }
 0x13e   : > { %v883_v6 = vadd.f32 %v3012_v61, %v859_v0 }
 0x13f   : > { %v2384_v62 = vpop.f32.mrf.mxu1  ;;  %v813_v7 = vpop.f32.mrf.mxu0 }
 0x140   : > { %v901_v9 = vmax.f32 %v883_v6, 0.0  ;;  %v860_v10 = vadd.f32 %v813_v7, %v2984_v3 }
 0x141   : > { %v3051_v4 = vpop.f32.mrf.mxu1  ;;  %v2344_v48 = vpop.f32.mrf.mxu0 }
 0x142   : > { %v2087_v57 = vpack.c.bf16 %v901_v9, %v900_v56  ;;  %v884_v30 = vadd.f32 %v3012_v61, %v860_v10 }
 0x143   : > { %v2385_v23 = vpop.f32.mrf.mxu1  ;;  %v816_v14 = vpop.f32.mrf.mxu0 }
 0x144   : > { %2161 = vst [vmem:[%s3026_s26 + $0x18] sm:$0xff] %v2087_v57   ;;  %v861_v5 = vadd.f32 %v816_v14, %v2986_v43  ;;  %v902_v3 = vmax.f32 %v884_v30, 0.0 }
 0x145   : > { %v3055_v11 = vpop.f32.mrf.mxu1  ;;  %v2345_v17 = vpop.f32.mrf.mxu0 }
 0x146   : > { %v885_v20 = vadd.f32 %v3012_v61, %v861_v5 }
 0x147   : > { %v2388_v15 = vpop.f32.mrf.mxu1  ;;  %v821_v21 = vpop.f32.mrf.mxu0 }
 0x148   : > { %v903_v25 = vmax.f32 %v885_v20, 0.0  ;;  %v862_v26 = vadd.f32 %v821_v21, %v2988_v13 }
 0x149   : > { %v3060_v19 = vpop.f32.mrf.mxu1  ;;  %v2348_v27 = vpop.f32.mrf.mxu0 }
 0x14a   : > { %v2092_v32 = vpack.c.bf16 %v903_v25, %v902_v3  ;;  %v886_v43 = vadd.f32 %v3012_v61, %v862_v26 }
 0x14b   : > { %v2389_v12 = vpop.f32.mrf.mxu1  ;;  %v824_v18 = vpop.f32.mrf.mxu0 }
 0x14c   : > { %2162 = vst [vmem:[%s3026_s26 + $0x20] sm:$0xff] %v2092_v32   ;;  %v863_v37 = vadd.f32 %v824_v18, %v2990_v16  ;;  %v904_v13 = vmax.f32 %v886_v43, 0.0 }
 0x14d   : > { %v3064_v29 = vpop.f32.mrf.mxu1  ;;  %v2349_v38 = vpop.f32.mrf.mxu0 }
 0x14e   : > { %v887_v39 = vadd.f32 %v3012_v61, %v863_v37 }
 0x14f   : > { %v2392_v35 = vpop.f32.mrf.mxu1  ;;  %v829_v42 = vpop.f32.mrf.mxu0 }
 0x150   : > { %v905_v24 = vmax.f32 %v887_v39, 0.0  ;;  %v864_v49 = vadd.f32 %v829_v42, %v2992_v22 }
 0x151   : > { %v3069_v41 = vpop.f32.mrf.mxu1  ;;  %v2352_v46 = vpop.f32.mrf.mxu0 }
 0x152   : > { %v2097_v52 = vpack.c.bf16 %v905_v24, %v904_v13  ;;  %v888_v16 = vadd.f32 %v3012_v61, %v864_v49 }
 0x153   : > { %v2393_v45 = vpop.f32.mrf.mxu1  ;;  %v832_v54 = vpop.f32.mrf.mxu0 }
 0x154   : > { %2163 = vst [vmem:[%s3026_s26 + $0x28] sm:$0xff] %v2097_v52   ;;  %v865_v60 = vadd.f32 %v832_v54, %v2994_v28  ;;  %v906_v22 = vmax.f32 %v888_v16, 0.0 }
 0x155   : > { %v3073_v50 = vpop.f32.mrf.mxu1  ;;  %v2353_v62 = vpop.f32.mrf.mxu0 }
 0x156   : > { %v889_v0 = vadd.f32 %v3012_v61, %v865_v60 }
 0x157   : > { %v2396_v59 = vpop.f32.mrf.mxu1  ;;  %v837_v2 = vpop.f32.mrf.mxu0 }
 0x158   : > { %v907_v7 = vmax.f32 %v889_v0, 0.0  ;;  %v866_v23 = vadd.f32 %v837_v2, %v2996_v34 }
 0x159   : > { %v3078_v51 = vpop.f32.mrf.mxu1  ;;  %v2356_v56 = vpop.f32.mrf.mxu0 }
 0x15a   : > { %v2102_v10 = vpack.c.bf16 %v907_v7, %v906_v22  ;;  %v890_v28 = vadd.f32 %v3012_v61, %v866_v23 }
 0x15b   : > { %v2397_v6 = vpop.f32.mrf.mxu1  ;;  %v840_v48 = vpop.f32.mrf.mxu0 }
 0x15c   : > { %2164 = vst [vmem:[%s3026_s26 + $0x30] sm:$0xff] %v2102_v10   ;;  %v867_v14 = vadd.f32 %v840_v48, %v2998_v40  ;;  %v908_v34 = vmax.f32 %v890_v28, 0.0 }
 0x15d   : > { %v3082_v9 = vpop.f32.mrf.mxu1  ;;  %v2357_v15 = vpop.f32.mrf.mxu0 }
 0x15e   : > { %v891_v5 = vadd.f32 %v3012_v61, %v867_v14 }
 0x15f   : > { %v2400_v57 = vpop.f32.mrf.mxu1  ;;  %v845_v17 = vpop.f32.mrf.mxu0 }
 0x160   : > { %v909_v21 = vmax.f32 %v891_v5, 0.0  ;;  %v868_v12 = vadd.f32 %v845_v17, %v3000_v47 }
 0x161   : > { %v3087_v30 = vpop.f32.mrf.mxu1  ;;  %v2360_v3 = vpop.f32.mrf.mxu0 }
 0x162   : > { %v2107_v26 = vpack.c.bf16 %v909_v21, %v908_v34  ;;  %v892_v18 = vadd.f32 %v3012_v61, %v868_v12 }
 0x163   : > { %v2401_v20 = vpop.f32.mrf.mxu1  ;;  %v848_v27 = vpop.f32.mrf.mxu0 }
 0x164   : > { %2165 = vst [vmem:[%s3026_s26 + $0x38] sm:$0xff] %v2107_v26   ;;  %v869_v40 = vadd.f32 %v848_v27, %v3004_v53  ;;  %v910_v42 = vmax.f32 %v892_v18, 0.0 }
 0x165   : > { %v1555_v25 = vpop.f32.mrf.mxu1  ;;  %v2361_v35 = vpop.f32.mrf.mxu0 }
 0x166   : > { %v893_v37 = vadd.f32 %v3012_v61, %v869_v40 }
 0x167   : > { %v2448_v32 = vpop.f32.mrf.mxu1  ;;  %v1322_v38 = vpop.f32.mrf.mxu0 }
 0x168   : > { %v911_v45 = vmax.f32 %v893_v37, 0.0  ;;  %v1323_v47 = vadd.f32 %v1322_v38, %v3002_v1 }
 0x169   : > { %v1558_v43 = vpop.f32.mrf.mxu1  ;;  %v2408_v13 = vpop.f32.mrf.mxu0 }
 0x16a   : > { %v2112_v49 = vpack.c.bf16 %v911_v45, %v910_v42  ;;  %v1626_v46 = vadd.f32 %v1555_v25, %v1323_v47 }
 0x16b   : > { %v2449_v39 = vpop.f32.mrf.mxu1  ;;  %v1325_v52 = vpop.f32.mrf.mxu0 }
 0x16c   : > { %2166 = vst [vmem:[%s3026_s26 + $0x40] sm:$0xff] %v2112_v49   ;;  %v1326_v59 = vadd.f32 %v1325_v52, %v3006_v55  ;;  %v1644_v60 = vadd.f32 %v3012_v61, %v1626_v46 }
 0x16d   : > { %v1563_v24 = vpop.f32.mrf.mxu1  ;;  %v2409_v53 = vpop.f32.mrf.mxu0 }
 0x16e   : > { %v1627_v62 = vadd.f32 %v1558_v43, %v1326_v59  ;;  %v1662_v23 = vmax.f32 %v1644_v60, 0.0 }
 0x16f   : > { %v2452_v54 = vpop.f32.mrf.mxu1  ;;  %v1330_v0 = vpop.f32.mrf.mxu0 }
 0x170   : > { %v1645_v6 = vadd.f32 %v3012_v61, %v1627_v62  ;;  %v1331_v1 = vadd.f32 %v1330_v0, %v3014_v63 }
 0x171   : > { %v1566_v16 = vpop.f32.mrf.mxu1  ;;  %v2412_v22 = vpop.f32.mrf.mxu0 }
 0x172   : > { %v1663_v56 = vmax.f32 %v1645_v6, 0.0  ;;  %v1628_v10 = vadd.f32 %v1563_v24, %v1331_v1 }
 0x173   : > { %v2453_v2 = vpop.f32.mrf.mxu1  ;;  %v1333_v48 = vpop.f32.mrf.mxu0 }
 0x174   : > { %v2117_v55 = vpack.c.bf16 %v1663_v56, %v1662_v23  ;;  %v1334_v28 = vadd.f32 %v1333_v48, %v3019_v8  ;;  %v1646_v5 = vadd.f32 %v3012_v61, %v1628_v10 }
 0x175   : > { %v1571_v7 = vpop.f32.mrf.mxu1  ;;  %v2413_v14 = vpop.f32.mrf.mxu0 }
 0x176   : > { %2167 = vst [vmem:[%s3026_s26 + $0x48] sm:$0xff] %v2117_v55   ;;  %v1629_v17 = vadd.f32 %v1566_v16, %v1334_v28  ;;  %v1664_v25 = vmax.f32 %v1646_v5, 0.0 }
 0x177   : > { %v2456_v57 = vpop.f32.mrf.mxu1  ;;  %v1338_v20 = vpop.f32.mrf.mxu0 }
 0x178   : > { %v1647_v63 = vadd.f32 %v3012_v61, %v1629_v17  ;;  %v1339_v21 = vadd.f32 %v1338_v20, %v3028_v31 }
 0x179   : > { %v1574_v15 = vpop.f32.mrf.mxu1  ;;  %v2416_v12 = vpop.f32.mrf.mxu0 }
 0x17a   : > { %v1665_v26 = vmax.f32 %v1647_v63, 0.0  ;;  %v1630_v27 = vadd.f32 %v1571_v7, %v1339_v21 }
 0x17b   : > { %v2457_v34 = vpop.f32.mrf.mxu1  ;;  %v1341_v32 = vpop.f32.mrf.mxu0 }
 0x17c   : > { %v2122_v18 = vpack.c.bf16 %v1665_v26, %v1664_v25  ;;  %v1342_v40 = vadd.f32 %v1341_v32, %v3033_v36  ;;  %v1648_v37 = vadd.f32 %v3012_v61, %v1630_v27 }
 0x17d   : > { %v1579_v3 = vpop.f32.mrf.mxu1  ;;  %v2417_v35 = vpop.f32.mrf.mxu0 }
 0x17e   : > { %2168 = vst [vmem:[%s3026_s26 + $0x50] sm:$0xff] %v2122_v18   ;;  %v1631_v38 = vadd.f32 %v1574_v15, %v1342_v40  ;;  %v1666_v24 = vmax.f32 %v1648_v37, 0.0 }
 0x17f   : > { %v2460_v8 = vpop.f32.mrf.mxu1  ;;  %v1346_v39 = vpop.f32.mrf.mxu0 }
 0x180   : > { %v1649_v31 = vadd.f32 %v3012_v61, %v1631_v38  ;;  %v1347_v45 = vadd.f32 %v1346_v39, %v3037_v33 }
 0x181   : > { %v1582_v43 = vpop.f32.mrf.mxu1  ;;  %v2420_v47 = vpop.f32.mrf.mxu0 }
 0x182   : > { %v1667_v49 = vmax.f32 %v1649_v31, 0.0  ;;  %v1632_v46 = vadd.f32 %v1579_v3, %v1347_v45 }
 0x183   : > { %v2461_v42 = vpop.f32.mrf.mxu1  ;;  %v1349_v52 = vpop.f32.mrf.mxu0 }
 0x184   : > { %v2127_v54 = vpack.c.bf16 %v1667_v49, %v1666_v24  ;;  %v1350_v59 = vadd.f32 %v1349_v52, %v3042_v44  ;;  %v1650_v60 = vadd.f32 %v3012_v61, %v1632_v46 }
 0x185   : > { %v1587_v13 = vpop.f32.mrf.mxu1  ;;  %v2421_v53 = vpop.f32.mrf.mxu0 }
 0x186   : > { %2169 = vst [vmem:[%s3026_s26 + $0x58] sm:$0xff] %v2127_v54   ;;  %v1633_v62 = vadd.f32 %v1582_v43, %v1350_v59  ;;  %v1668_v7 = vmax.f32 %v1650_v60, 0.0 }
 0x187   : > { %v2464_v36 = vpop.f32.mrf.mxu1  ;;  %v1354_v0 = vpop.f32.mrf.mxu0 }
 0x188   : > { %v1651_v33 = vadd.f32 %v3012_v61, %v1633_v62  ;;  %v1355_v6 = vadd.f32 %v1354_v0, %v3046_v58 }
 0x189   : > { %v1590_v16 = vpop.f32.mrf.mxu1  ;;  %v2424_v1 = vpop.f32.mrf.mxu0 }
 0x18a   : > { %v1669_v23 = vmax.f32 %v1651_v33, 0.0  ;;  %v1634_v56 = vadd.f32 %v1587_v13, %v1355_v6 }
 0x18b   : > { %v2465_v2 = vpop.f32.mrf.mxu1  ;;  %v1357_v10 = vpop.f32.mrf.mxu0 }
 0x18c   : > { %v2132_v48 = vpack.c.bf16 %v1669_v23, %v1668_v7  ;;  %v1358_v57 = vadd.f32 %v1357_v10, %v3051_v4  ;;  %v1652_v14 = vadd.f32 %v3012_v61, %v1634_v56 }
 0x18d   : > { %v1595_v22 = vpop.f32.mrf.mxu1  ;;  %v2425_v55 = vpop.f32.mrf.mxu0 }
 0x18e   : > { %2170 = vst [vmem:[%s3026_s26 + $0x60] sm:$0xff] %v2132_v48   ;;  %v1635_v15 = vadd.f32 %v1590_v16, %v1358_v57  ;;  %v1670_v21 = vmax.f32 %v1652_v14, 0.0 }
 0x18f   : > { %v2468_v44 = vpop.f32.mrf.mxu1  ;;  %v1362_v5 = vpop.f32.mrf.mxu0 }
 0x190   : > { %v1653_v58 = vadd.f32 %v3012_v61, %v1635_v15  ;;  %v1363_v20 = vadd.f32 %v1362_v5, %v3055_v11 }
 0x191   : > { %v1598_v28 = vpop.f32.mrf.mxu1  ;;  %v2428_v34 = vpop.f32.mrf.mxu0 }
 0x192   : > { %v1671_v12 = vmax.f32 %v1653_v58, 0.0  ;;  %v1636_v3 = vadd.f32 %v1595_v22, %v1363_v20 }
 0x193   : > { %v2469_v17 = vpop.f32.mrf.mxu1  ;;  %v1365_v25 = vpop.f32.mrf.mxu0 }
 0x194   : > { %v2137_v26 = vpack.c.bf16 %v1671_v12, %v1670_v21  ;;  %v1366_v27 = vadd.f32 %v1365_v25, %v3060_v19  ;;  %v1654_v18 = vadd.f32 %v3012_v61, %v1636_v3 }
 0x195   : > { %v1603_v63 = vpop.f32.mrf.mxu1  ;;  %v2429_v32 = vpop.f32.mrf.mxu0 }
 0x196   : > { %2171 = vst [vmem:[%s3026_s26 + $0x68] sm:$0xff] %v2137_v26   ;;  %v1637_v40 = vadd.f32 %v1598_v28, %v1366_v27  ;;  %v1672_v42 = vmax.f32 %v1654_v18, 0.0 }
 0x197   : > { %v2472_v4 = vpop.f32.mrf.mxu1  ;;  %v1370_v35 = vpop.f32.mrf.mxu0 }
 0x198   : > { %v1655_v11 = vadd.f32 %v3012_v61, %v1637_v40  ;;  %v1371_v37 = vadd.f32 %v1370_v35, %v3064_v29 }
 0x199   : > { %v1606_v8 = vpop.f32.mrf.mxu1  ;;  %v2432_v38 = vpop.f32.mrf.mxu0 }
 0x19a   : > { %v1673_v31 = vmax.f32 %v1655_v11, 0.0  ;;  %v1638_v45 = vadd.f32 %v1603_v63, %v1371_v37 }
 0x19b   : > { %v2473_v43 = vpop.f32.mrf.mxu1  ;;  %v1373_v47 = vpop.f32.mrf.mxu0 }
 0x19c   : > { %v2142_v13 = vpack.c.bf16 %v1673_v31, %v1672_v42  ;;  %v1374_v24 = vadd.f32 %v1373_v47, %v3069_v41  ;;  %v1656_v52 = vadd.f32 %v3012_v61, %v1638_v45 }
 0x19d   : > { %v1611_v39 = vpop.f32.mrf.mxu1  ;;  %v2433_v49 = vpop.f32.mrf.mxu0 }
 0x19e   : > { %2172 = vst [vmem:[%s3026_s26 + $0x70] sm:$0xff] %v2142_v13   ;;  %v1639_v36 = vadd.f32 %v1606_v8, %v1374_v24  ;;  %v1674_v62 = vmax.f32 %v1656_v52, 0.0 }
 0x19f   : > { %v2476_v19 = vpop.f32.mrf.mxu1  ;;  %v1378_v54 = vpop.f32.mrf.mxu0 }
 0x1a0   : > { %v1657_v29 = vadd.f32 %v3012_v61, %v1639_v36  ;;  %v1379_v53 = vadd.f32 %v1378_v54, %v3073_v50 }
 0x1a1   : > { %v1614_v46 = vpop.f32.mrf.mxu1  ;;  %v2436_v16 = vpop.f32.mrf.mxu0 }
 0x1a2   : > { %v1675_v0 = vmax.f32 %v1657_v29, 0.0  ;;  %v1640_v2 = vadd.f32 %v1611_v39, %v1379_v53 }
 0x1a3   : > { %v2477_v59 = vpop.f32.mrf.mxu1  ;;  %v1381_v33 = vpop.f32.mrf.mxu0 }
 0x1a4   : > { %v2147_v6 = vpack.c.bf16 %v1675_v0, %v1674_v62  ;;  %v1382_v1 = vadd.f32 %v1381_v33, %v3078_v51  ;;  %v1658_v23 = vadd.f32 %v3012_v61, %v1640_v2 }
 0x1a5   : > { %v1619_v60 = vpop.f32.mrf.mxu1  ;;  %v2437_v22 = vpop.f32.mrf.mxu0 }
 0x1a6   : > { %2173 = vst [vmem:[%s3026_s26 + $0x78] sm:$0xff] %v2147_v6   ;;  %v1641_v56 = vadd.f32 %v1614_v46, %v1382_v1  ;;  %v1676_v55 = vmax.f32 %v1658_v23, 0.0 }
 0x1a7   : > { %v2480_v41 = vpop.f32.mrf.mxu1  ;;  %v1386_v10 = vpop.f32.mrf.mxu0 }
 0x1a8   : > { %v1659_v50 = vadd.f32 %v3012_v61, %v1641_v56  ;;  %v1387_v48 = vadd.f32 %v1386_v10, %v3082_v9 }
 0x1a9   : > { %v1622_v7 = vpop.f32.mrf.mxu1  ;;  %v2440_v57 = vpop.f32.mrf.mxu0 }
 0x1aa   : > { %v1677_v28 = vmax.f32 %v1659_v50, 0.0  ;;  %v1642_v14 = vadd.f32 %v1619_v60, %v1387_v48 }
 0x1ab   : > { %v2481_v44 = vpop.f32.mrf.mxu1  ;;  %v1389_v15 = vpop.f32.mrf.mxu0 }
 0x1ac   : > { %v2152_v51 = vpack.c.bf16 %v1677_v28, %v1676_v55  ;;  %v1390_v5 = vadd.f32 %v1389_v15, %v3087_v30  ;;  %v1660_v58 = vadd.f32 %v3012_v61, %v1642_v14 }
 0x1ad   : > { %v2441_v17 = vpop.f32.mrf.mxu0 }
 0x1ae   : > { %2174 = vst [vmem:[%s3026_s26 + $0x80] sm:$0xff] %v2152_v51   ;;  %v1643_v20 = vadd.f32 %v1622_v7, %v1390_v5  ;;  %v1678_v63 = vmax.f32 %v1660_v58, 0.0 }
 0x1b0   : > { %v1661_v34 = vadd.f32 %v3012_v61, %v1643_v20 }
 0x1b2   : > { %v1679_v21 = vmax.f32 %v1661_v34, 0.0 }
 0x1b4   : > { %v2157_v12 = vpack.c.bf16 %v1679_v21, %v1678_v63 }
 0x1b6   : > { %2175 = vst [vmem:[%s3026_s26 + $0x88] sm:$0xff] %v2157_v12  }
 0x1b7 PF: > { %s13_s14 = sadd.s32 1, %s2588_s14   ;;  %s3154_s12 = smov %s2584_s13 }
 0x1b8   : > { %p10_p5 = scmp.ge.s32.totalorder %s13_s14, 4   ;;  %s3155_s13 = smov %s3157_s15 }
 0x1ba   :  { %12 = sbr.rel (!%p10_p5) target bundleno = 2 (0x2), region = 68 }

// kernel: sha_res_block_forward.3
= control target key start
LH: loop header
LB: loop body
LE: loop exit
PB: predicated region body
PF: predicated region fallthrough
CT: control target
= control target key end

     0   :  { %s2336_s12 = smov 0   ;;  %s2338_s13 = smov 0   ;;  %s2910_s0 = inlined_call_operand.vmem [shape: bf16[2,324,48], index: 0, kind: input, shape index: {}]   ;;  %s2911_s1 = inlined_call_operand.vmem [shape: bf16[144,128], index: 1, kind: input, shape index: {}]   ;;  %s2912_s2 = inlined_call_operand.vmem [shape: f32[1,128], index: 2, kind: input, shape index: {}]   ;;  %s2913_s3 = inlined_call_operand.vmem [shape: f32[2,288,128], index: 3, kind: output, shape index: {}]  }
   0x1   :  { %s2340_s14 = smov 0  }
   0x2 LB: > { %s22_s15 = sadd.s32 1, %s2308_s13  ;;  %p1754_p0 = scmp.ge.s32.totalorder %s2312_s14, 1  ;;  %s2312_s14 = sphi %s2340_s14, %s13_s14   ;;  %s2308_s13 = sphi %s2338_s13, %s2915_s13   ;;  %s2304_s12 = sphi %s2336_s12, %s2914_s12  }
   0x3   : > { %p23_p1 = scmp.ge.s32.totalorder %s22_s15, 2  ;;  %p168_p2 = scmp.lt.s32.totalorder %s2312_s14, 3 }
   0x5   : > { %s2917_s15 = smov (%p23_p1, %s22_s15), 0  ;;  %p169_p3 = pnand %p1754_p0, %p168_p2 }
   0x6   : > { %p202_p4 = scmp.lt.s32.totalorder (!%p169_p3), %s2304_s12, 1 }
   0x7   : > { %172 = sbr.rel (%p169_p3) target bundleno = 437 (0x1b5), region = 32 }
   0xc   : > { %v2228_v0 = vld [vmem:[%s2911_s1 + $0x28] sm:$0xff]   ;;  %v2314_v1 = vmov 0.0   ;;  %v2229_v2 = vld [vmem:[%s2911_s1 + $0x10] sm:$0xff]   ;;  %v2230_v3 = vld [vmem:[%s2911_s1 + $0x20] sm:$0xff]   ;;  %vm2315_vm0 = vmmov 0   ;;  %s2919_s12 = smov (!%p202_p4, %s2304_s12), 1 }
   0xd   : > { %1948 = vmatprep.subr.bf16.mxu0 %v2314_v1  ;;  %1990 = vmatprep.subr.bf16.mxu1 %v2314_v1  ;;  %v2231_v4 = vld [vmem:[%s2911_s1 + $0x8] sm:$0xff]   ;;  %v2232_v5 = vld [vmem:[%s2911_s1 + $0x18] sm:$0xff]   ;;  %s2200_s26 = smul.u32 164, %s2919_s12  ;;  %v2233_v6 = vld [vmem:[%s2911_s1] sm:$0xff]   ;;  %vm344_vm1 = vcmask 392192   ;;  %vm306_vm2 = vcmask 1046528  }
   0xe   : > { %1949 = vmatpush3.bf16.msra.mxu0 %v2228_v0  ;;  %1954 = vmatprep.mubr.msk.bf16.mxu0 %vm2315_vm0, %v2314_v1  ;;  %v2238_v8 = vld [vmem:[%s2911_s1 + $0x28] sm:$0xff]   ;;  %v2237_v14 = vld [vmem:[%s2911_s1 + $0x40] sm:$0xff]   ;;  %v2243_v21 = vld [vmem:[%s2911_s1 + $0x38] sm:$0xff]   ;;  %vm708_vm3 = vcmask 1045504  }
   0xf   : > { %1991 = vmatpush3.bf16.msra.mxu1 %v2229_v2  ;;  %1950 = vmatprep.subr.bf16.mxu0 %v2314_v1  ;;  %s2388_s4 = scalar_lea.vmem %s2910_s0, %s2200_s26  ;;  %v2244_v19 = vld [vmem:[%s2911_s1 + $0x20] sm:$0xff]   ;;  %v2249_v24 = vld [vmem:[%s2911_s1 + $0x18] sm:$0xff]   ;;  %v2248_v26 = vld [vmem:[%s2911_s1 + $0x30] sm:$0xff]  }
  0x10   : > { %1992 = vmatprep.subr.bf16.mxu1 %v2314_v1  ;;  %1996 = vmatprep.mubr.msk.bf16.mxu1 %vm2315_vm0, %v2314_v1  ;;  %v227_v7 = vld [vmem:[%s2388_s4 + $0xc] sm:$0xf]  ;;  %v248_v9 = vld [vmem:[%s2388_s4 + $0x8] sm:$0xe]  ;;  %v2235_v10 = vld [vmem:[%s2388_s4 + $0x10] sm:$0xff]  }
  0x11   : > { %v1757_v11 = vcombine.low %v248_v9, %v227_v7  ;;  %v2236_v12 = vld [vmem:[%s2388_s4] sm:$0xff]   ;;  %v308_v13 = vrot.slane %v2235_v10, 1  ;;  %v2239_v16 = vld [vmem:[%s2388_s4 + $0x18] sm:$0xff]   ;;  %v226_v17 = vld [vmem:[%s2388_s4 + $0x8] sm:$0xf] }
  0x12   : > { %1951 = vmatpush3.bf16.msra.mxu0 %v2230_v3  ;;  %v310_v20 = vrot.slane %v2239_v16, 1  ;;  %v1780_v22 = vcombine.low %v226_v17, %v227_v7  ;;  %v2241_v23 = vld [vmem:[%s2388_s4 + $0x20] sm:$0xff]   ;;  %v2242_v29 = vld [vmem:[%s2388_s4 + $0x28] sm:$0xff]   ;;  %v2245_v32 = vld [vmem:[%s2388_s4 + $0x30] sm:$0xff]  }
  0x13   : > { %1993 = vmatpush3.bf16.msra.mxu1 %v2231_v4  ;;  %1952 = vmatprep.subr.bf16.mxu0 %v2314_v1  ;;  %v307_v15 = vrot.slane %v1757_v11, 1  ;;  %v312_v27 = vrot.slane %v2241_v23, 1  ;;  %v314_v30 = vrot.slane %v2242_v29, 1  ;;  %v316_v33 = vrot.slane %v2245_v32, 1  ;;  %v2246_v35 = vld [vmem:[%s2388_s4 + $0x38] sm:$0xff]   ;;  %v2247_v37 = vld [vmem:[%s2388_s4 + $0x40] sm:$0xff]  }
  0x14   : > { %1994 = vmatprep.subr.bf16.mxu1 %v2314_v1  ;;  %v311_v25 = vsel %vm306_vm2, %v308_v13, %v310_v20  ;;  %v318_v36 = vrot.slane %v2246_v35, 1  ;;  %v320_v39 = vrot.slane %v2247_v37, 1  ;;  %v2250_v41 = vld [vmem:[%s2388_s4 + $0x48] sm:$0xff]   ;;  %v2251_v44 = vld [vmem:[%s2388_s4 + $0x50] ss:$0 sps:$4 sm:$0x11]  }
  0x15   : > { %v309_v18 = vsel %vm306_vm2, %v307_v15, %v308_v13  ;;  %v313_v28 = vsel %vm306_vm2, %v310_v20, %v312_v27  ;;  %v315_v31 = vsel %vm306_vm2, %v312_v27, %v314_v30  ;;  %v317_v34 = vsel %vm306_vm2, %v314_v30, %v316_v33  ;;  %v2484_v45 = vld [vmem:[%s2388_s4 + $0x54] sm:$0xf]  ;;  %v962_v46 = vld [vmem:[%s2388_s4 + $0x50] sm:$0xe]  ;;  %v2491_v49 = vld [vmem:[%s2388_s4 + $0x58] sm:$0xff]  }
  0x16   : > { %1953 = vmatpush3.bf16.msra.mxu0 %v2232_v5  ;;  %v319_v38 = vsel %vm306_vm2, %v316_v33, %v318_v36  ;;  %v321_v40 = vsel %vm306_vm2, %v318_v36, %v320_v39  ;;  %v322_v42 = vrot.slane %v2250_v41, 1  ;;  %v324_v47 = vrot.slane %v2251_v44, 1  ;;  %v2252_v51 = vld [vmem:[%s2388_s4 + $0x10] sm:$0xfc]   ;;  %v2253_v52 = vld [vmem:[%s2388_s4 + $0x18] sm:$0xff]   ;;  %v2257_v58 = vld [vmem:[%s2911_s1 + $0x40] sm:$0xff]  }
  0x17   : > { %1995 = vmatpush3.bf16.msra.mxu1 %v2233_v6  ;;  %2032 = vmatprep.subr.bf16.mxu0 %v2314_v1  ;;  %v1816_v48 = vcombine.low %v962_v46, %v2484_v45  ;;  %v1021_v54 = vrot.slane %v2491_v49, 1  ;;  %v709_v55 = vrot.slane %v2252_v51, 2  ;;  %v710_v56 = vrot.slane %v2253_v52, 2  ;;  %v2508_v59 = vld [vmem:[%s2388_s4 + $0x60] sm:$0xff]   ;;  %v2256_v61 = vld [vmem:[%s2911_s1 + $0x10] sm:$0xff]   ;;  %v2265_v0 = vld [vmem:[%s2911_s1 + $0x38] sm:$0xff]  }
  0x18   : > { %2074 = vmatprep.subr.bf16.mxu1 %v2314_v1  ;;  %v323_v43 = vsel %vm306_vm2, %v320_v39, %v322_v42  ;;  %v325_v50 = vsel %vm306_vm2, %v322_v42, %v324_v47  ;;  %v2258_v62 = vld [vmem:[%s2388_s4 + $0x20] sm:$0xff]   ;;  %v1023_v63 = vrot.slane %v2508_v59, 1  ;;  %v2264_v3 = vld [vmem:[%s2911_s1 + $0x8] sm:$0xff]   ;;  %v2273_v6 = vld [vmem:[%s2911_s1 + $0x30] sm:$0xff]  }
  0x19   : > { %1955 = vmatmul.mubr.msk.bf16.vlgmr.msra.gmra.mxu0 %vm344_vm1, %v309_v18  ;;  %v1020_v53 = vrot.slane %v1816_v48, 1  ;;  %v711_v60 = vsel %vm708_vm3, %v709_v55, %v710_v56  ;;  %v712_v2 = vrot.slane %v2258_v62, 2  ;;  %v2532_v5 = vld [vmem:[%s2388_s4 + $0x68] sm:$0xff]   ;;  %v2272_v9 = vld [vmem:[%s2911_s1] sm:$0xff]   ;;  %v2553_v13 = vld [vmem:[%s2388_s4 + $0x70] sm:$0xff]  }
  0x1a   : > { %1997 = vmatmul.mubr.msk.bf16.vlgmr.msra.gmra.mxu1 %vm344_vm1, %v2236_v12  ;;  %2033 = vmatpush3.bf16.msra.mxu0 %v2237_v14  ;;  %v1024_v4 = vsel %vm306_vm2, %v1021_v54, %v1023_v63  ;;  %v2262_v15 = vld [vmem:[%s2388_s4 + $0x30] sm:$0xff]   ;;  %v2268_v27 = vld [vmem:[%s2388_s4 + $0x40] sm:$0xff]   ;;  %v2270_v33 = vld [vmem:[%s2388_s4 + $0x48] sm:$0xff]  }
  0x1b   : > { %2075 = vmatpush3.bf16.msra.mxu1 %v2238_v8  ;;  %2000 = vmatprep.mubr.msk.bf16.mxu1 %vm2315_vm0, %v2314_v1  ;;  %v1022_v57 = vsel %vm306_vm2, %v1020_v53, %v1021_v54  ;;  %v713_v7 = vsel %vm708_vm3, %v710_v56, %v712_v2  ;;  %v2260_v8 = vld [vmem:[%s2388_s4 + $0x28] sm:$0xff]   ;;  %v716_v17 = vrot.slane %v2262_v15, 2  ;;  %v2274_v39 = vld [vmem:[%s2388_s4 + $0x50] sm:$0xff]   ;;  %v2276_v46 = vld [vmem:[%s2388_s4 + $0x58] ss:$0 sps:$4 sm:$0x33]  }
  0x1c   : > { %2076 = vmatprep.subr.bf16.mxu1 %v2314_v1  ;;  %1958 = vmatprep.mubr.msk.bf16.mxu0 %vm2315_vm0, %v2314_v1  ;;  %v714_v11 = vrot.slane %v2260_v8, 2  ;;  %v724_v41 = vrot.slane %v2274_v39, 2  ;;  %v726_v48 = vrot.slane %v2276_v46, 2  ;;  %v2279_v51 = vld [vmem:[%s2388_s4 + $0x58] sm:$0xfc]   ;;  %v2280_v52 = vld [vmem:[%s2388_s4 + $0x60] sm:$0xff]  }
  0x1d   : > { %2034 = vmatprep.subr.bf16.mxu0 %v2314_v1  ;;  %v1420_v54 = vrot.slane %v2279_v51, 2  ;;  %v1421_v55 = vrot.slane %v2280_v52, 2 }
  0x1e   : > { %2035 = vmatpush3.bf16.msra.mxu0 %v2243_v21  ;;  %v715_v14 = vsel %vm708_vm3, %v712_v2, %v714_v11  ;;  %v717_v20 = vsel %vm708_vm3, %v714_v11, %v716_v17  ;;  %v2266_v21 = vld [vmem:[%s2388_s4 + $0x38] sm:$0xff]   ;;  %v727_v53 = vsel %vm708_vm3, %v724_v41, %v726_v48  ;;  %v2287_v11 = vld [vmem:[%s2388_s4 + $0x90] sm:$0xff]  }
  0x1f   : > { %2077 = vmatpush3.bf16.msra.mxu1 %v2244_v19  ;;  %2036 = vmatprep.subr.bf16.mxu0 %v2314_v1  ;;  %v2566_v19 = vld [vmem:[%s2388_s4 + $0x78] sm:$0xff]   ;;  %v1422_v56 = vsel %vm708_vm3, %v1420_v54, %v1421_v55 }
  0x20   : > { %2078 = vmatprep.subr.bf16.mxu1 %v2314_v1 }
  0x21   : > { %1959 = vmatmul.mubr.msk.bf16.gmra.mxu0 %vm344_vm1, %v311_v25  ;;  %v2579_v25 = vld [vmem:[%s2388_s4 + $0x80] sm:$0xff]  }
  0x22   : > { %2001 = vmatmul.mubr.msk.bf16.gmra.mxu1 %vm344_vm1, %v1780_v22  ;;  %1962 = vmatprep.mubr.msk.bf16.mxu0 %vm2315_vm0, %v2314_v1  ;;  %v1029_v22 = vrot.slane %v2566_v19, 1 }
  0x23   : > { %2004 = vmatprep.mubr.msk.bf16.mxu1 %vm2315_vm0, %v2314_v1  ;;  %2079 = vmatpush3.bf16.msra.mxu1 %v2249_v24 }
  0x24   : > { %2158 = vmatprep.subr.bf16.mxu1 %v2314_v1  ;;  %2037 = vmatpush3.bf16.msra.mxu0 %v2248_v26 }
  0x25   : > { %2116 = vmatprep.subr.bf16.mxu0 %v2314_v1 }
  0x29   : > { %1963 = vmatmul.mubr.msk.bf16.gmra.mxu0 %vm344_vm1, %v313_v28  ;;  %v1031_v28 = vrot.slane %v2579_v25, 1 }
  0x2a   : > { %2005 = vmatmul.mubr.msk.bf16.gmra.mxu1 %vm344_vm1, %v2235_v10  ;;  %1966 = vmatprep.mubr.msk.bf16.mxu0 %vm2315_vm0, %v2314_v1  ;;  %v1025_v10 = vrot.slane %v2532_v5, 1 }
  0x2b   : > { %2008 = vmatprep.mubr.msk.bf16.mxu1 %vm2315_vm0, %v2314_v1  ;;  %v1032_v30 = vsel %vm306_vm2, %v1029_v22, %v1031_v28 }
  0x2c   : > { %v1026_v12 = vsel %vm306_vm2, %v1023_v63, %v1025_v10  ;;  %v2283_v63 = vld [vmem:[%s2388_s4 + $0x70] sm:$0xff]  }
  0x2d   : > { %v1425_v2 = vrot.slane %v2283_v63, 2 }
  0x31   : > { %1967 = vmatmul.mubr.msk.bf16.gmra.mxu0 %vm344_vm1, %v315_v31  ;;  %v2592_v31 = vld [vmem:[%s2388_s4 + $0x88] sm:$0xff]  }
  0x32   : > { %2009 = vmatmul.mubr.msk.bf16.gmra.mxu1 %vm344_vm1, %v2239_v16  ;;  %1970 = vmatprep.mubr.msk.bf16.mxu0 %vm2315_vm0, %v2314_v1  ;;  %v1027_v16 = vrot.slane %v2553_v13, 1 }
  0x33   : > { %2012 = vmatprep.mubr.msk.bf16.mxu1 %vm2315_vm0, %v2314_v1 }
  0x34   : > { %v1028_v18 = vsel %vm306_vm2, %v1025_v10, %v1027_v16  ;;  %v1030_v24 = vsel %vm306_vm2, %v1027_v16, %v1029_v22 }
  0x39   : > { %1971 = vmatmul.mubr.msk.bf16.gmra.mxu0 %vm344_vm1, %v317_v34  ;;  %v1033_v34 = vrot.slane %v2592_v31, 1 }
  0x3a   : > { %2013 = vmatmul.mubr.msk.bf16.gmra.mxu1 %vm344_vm1, %v2241_v23  ;;  %1974 = vmatprep.mubr.msk.bf16.mxu0 %vm2315_vm0, %v2314_v1  ;;  %v718_v23 = vrot.slane %v2266_v21, 2 }
  0x3b   : > { %2016 = vmatprep.mubr.msk.bf16.mxu1 %vm2315_vm0, %v2314_v1  ;;  %v1034_v36 = vsel %vm306_vm2, %v1031_v28, %v1033_v34 }
  0x3c   : > { %v719_v26 = vsel %vm708_vm3, %v716_v17, %v718_v23 }
  0x41   : > { %1975 = vmatmul.mubr.msk.bf16.gmra.mxu0 %vm344_vm1, %v319_v38 }
  0x42   : > { %2017 = vmatmul.mubr.msk.bf16.gmra.mxu1 %vm344_vm1, %v2242_v29  ;;  %1978 = vmatprep.mubr.msk.bf16.mxu0 %vm2315_vm0, %v2314_v1  ;;  %v720_v29 = vrot.slane %v2268_v27, 2 }
  0x43   : > { %2020 = vmatprep.mubr.msk.bf16.mxu1 %vm2315_vm0, %v2314_v1 }
  0x49   : > { %1979 = vmatmul.mubr.msk.bf16.gmra.mxu0 %vm344_vm1, %v321_v40 }
  0x4a   : > { %2021 = vmatmul.mubr.msk.bf16.gmra.mxu1 %vm344_vm1, %v2245_v32  ;;  %1982 = vmatprep.mubr.msk.bf16.mxu0 %vm2315_vm0, %v2314_v1  ;;  %v721_v32 = vsel %vm708_vm3, %v718_v23, %v720_v29  ;;  %v2289_v23 = vld [vmem:[%s2388_s4 + $0xa0] ss:$0 sps:$4 sm:$0x33]  }
  0x4b   : > { %2024 = vmatprep.mubr.msk.bf16.mxu1 %vm2315_vm0, %v2314_v1 }
  0x51   : > { %1983 = vmatmul.mubr.msk.bf16.gmra.mxu0 %vm344_vm1, %v323_v43  ;;  %v2277_v43 = vld [vmem:[%s2388_s4 + $0x98] ss:$0 sps:$4 sm:$0x11]  }
  0x52   : > { %2025 = vmatmul.mubr.msk.bf16.gmra.mxu1 %vm344_vm1, %v2246_v35  ;;  %1986 = vmatprep.mubr.msk.bf16.mxu0 %vm2315_vm0, %v2314_v1  ;;  %v722_v35 = vrot.slane %v2270_v33, 2  ;;  %v1037_v47 = vrot.slane %v2277_v43, 1 }
  0x53   : > { %2028 = vmatprep.mubr.msk.bf16.mxu1 %vm2315_vm0, %v2314_v1 }
  0x54   : > { %v723_v38 = vsel %vm708_vm3, %v720_v29, %v722_v35  ;;  %v725_v44 = vsel %vm708_vm3, %v722_v35, %v724_v41 }
  0x59   : > { %1987 = vmatmul.mubr.msk.bf16.gmra.mxu0 %vm344_vm1, %v325_v50 }
  0x5a   : > { %2029 = vmatmul.mubr.msk.bf16.gmra.mxu1 %vm344_vm1, %v2247_v37  ;;  %2038 = vmatprep.mubr.msk.bf16.mxu0 %vm2315_vm0, %v2314_v1  ;;  %v2275_v37 = vld [vmem:[%s2388_s4 + $0x90] sm:$0xff]  }
  0x5b   : > { %2080 = vmatprep.mubr.msk.bf16.mxu1 %vm2315_vm0, %v2314_v1  ;;  %v1035_v40 = vrot.slane %v2275_v37, 1 }
  0x5d   : > { %v1036_v42 = vsel %vm306_vm2, %v1033_v34, %v1035_v40  ;;  %v1038_v50 = vsel %vm306_vm2, %v1035_v40, %v1037_v47 }
  0x61   : > { %2039 = vmatmul.mubr.msk.bf16.vlgmr.msra.gmra.mxu0 %vm344_vm1, %v711_v60 }
  0x62   : > { %2081 = vmatmul.mubr.msk.bf16.vlgmr.msra.gmra.mxu1 %vm344_vm1, %v1022_v57  ;;  %2117 = vmatpush3.bf16.msra.mxu0 %v2256_v61  ;;  %v2282_v57 = vld [vmem:[%s2388_s4 + $0x68] sm:$0xff]   ;;  %v940_v61 = vld [vmem:[%s2388_s4 + $0x50] sm:$0xf] }
  0x63   : > { %2159 = vmatpush3.bf16.msra.mxu1 %v2257_v58  ;;  %2084 = vmatprep.mubr.msk.bf16.mxu1 %vm2315_vm0, %v2314_v1  ;;  %v2278_v58 = vld [vmem:[%s2388_s4 + $0x48] sm:$0xff]   ;;  %v1423_v60 = vrot.slane %v2282_v57, 2 }
  0x64   : > { %2160 = vmatprep.subr.bf16.mxu1 %v2314_v1  ;;  %2042 = vmatprep.mubr.msk.bf16.mxu0 %vm2315_vm0, %v2314_v1 }
  0x65   : > { %2118 = vmatprep.subr.bf16.mxu0 %v2314_v1  ;;  %v1424_v62 = vsel %vm708_vm3, %v1421_v55, %v1423_v60 }
  0x66   : > { %2119 = vmatpush3.bf16.msra.mxu0 %v2264_v3  ;;  %v1426_v3 = vsel %vm708_vm3, %v1423_v60, %v1425_v2 }
  0x67   : > { %2161 = vmatpush3.bf16.msra.mxu1 %v2265_v0  ;;  %2120 = vmatprep.subr.bf16.mxu0 %v2314_v1  ;;  %v1839_v0 = vcombine.low %v940_v61, %v2484_v45 }
  0x68   : > { %2162 = vmatprep.subr.bf16.mxu1 %v2314_v1 }
  0x69   : > { %2043 = vmatmul.mubr.msk.bf16.gmra.mxu0 %vm344_vm1, %v713_v7  ;;  %v2285_v7 = vld [vmem:[%s2388_s4 + $0x80] sm:$0xff]  }
  0x6a   : > { %2085 = vmatmul.mubr.msk.bf16.gmra.mxu1 %vm344_vm1, %v1024_v4  ;;  %2046 = vmatprep.mubr.msk.bf16.mxu0 %vm2315_vm0, %v2314_v1  ;;  %v2284_v4 = vld [vmem:[%s2388_s4 + $0x78] sm:$0xff]   ;;  %v1429_v8 = vrot.slane %v2285_v7, 2 }
  0x6b   : > { %2088 = vmatprep.mubr.msk.bf16.mxu1 %vm2315_vm0, %v2314_v1  ;;  %2163 = vmatpush3.bf16.msra.mxu1 %v2273_v6  ;;  %v1427_v45 = vrot.slane %v2284_v4, 2 }
  0x6c   : > { %2121 = vmatpush3.bf16.msra.mxu0 %v2272_v9  ;;  %v2286_v9 = vld [vmem:[%s2388_s4 + $0x88] sm:$0xff]  }
  0x6d   : > { %v1428_v6 = vsel %vm708_vm3, %v1425_v2, %v1427_v45  ;;  %v1431_v10 = vrot.slane %v2286_v9, 2 }
  0x71   : > { %2047 = vmatmul.mubr.msk.bf16.gmra.mxu0 %vm344_vm1, %v715_v14  ;;  %v2288_v14 = vld [vmem:[%s2388_s4 + $0x98] sm:$0xff]   ;;  %s2201_s4 = smul.u32 288, %s2919_s12 }
  0x72   : > { %2089 = vmatmul.mubr.msk.bf16.gmra.mxu1 %vm344_vm1, %v1026_v12  ;;  %2050 = vmatprep.mubr.msk.bf16.mxu0 %vm2315_vm0, %v2314_v1  ;;  %v1433_v12 = vrot.slane %v2287_v11, 2  ;;  %v1435_v16 = vrot.slane %v2288_v14, 2 }
  0x73   : > { %2092 = vmatprep.mubr.msk.bf16.mxu1 %vm2315_vm0, %v2314_v1  ;;  %s2758_s11 = scalar_lea.vmem %s2913_s3, %s2201_s4 }
  0x74   : > { %v1436_v22 = vsel %vm708_vm3, %v1433_v12, %v1435_v16 }
  0x79   : > { %2051 = vmatmul.mubr.msk.bf16.gmra.mxu0 %vm344_vm1, %v717_v20 }
  0x7a   : > { %2093 = vmatmul.mubr.msk.bf16.gmra.mxu1 %vm344_vm1, %v1028_v18  ;;  %2054 = vmatprep.mubr.msk.bf16.mxu0 %vm2315_vm0, %v2314_v1 }
  0x7b   : > { %2096 = vmatprep.mubr.msk.bf16.mxu1 %vm2315_vm0, %v2314_v1 }
  0x81   : > { %2055 = vmatmul.mubr.msk.bf16.gmra.mxu0 %vm344_vm1, %v719_v26 }
  0x82   : > { %2097 = vmatmul.mubr.msk.bf16.gmra.mxu1 %vm344_vm1, %v1030_v24  ;;  %2058 = vmatprep.mubr.msk.bf16.mxu0 %vm2315_vm0, %v2314_v1 }
  0x83   : > { %2100 = vmatprep.mubr.msk.bf16.mxu1 %vm2315_vm0, %v2314_v1 }
  0x89   : > { %2059 = vmatmul.mubr.msk.bf16.gmra.mxu0 %vm344_vm1, %v721_v32 }
  0x8a   : > { %2101 = vmatmul.mubr.msk.bf16.gmra.mxu1 %vm344_vm1, %v1032_v30  ;;  %2062 = vmatprep.mubr.msk.bf16.mxu0 %vm2315_vm0, %v2314_v1 }
  0x8b   : > { %2104 = vmatprep.mubr.msk.bf16.mxu1 %vm2315_vm0, %v2314_v1 }
  0x91   : > { %2063 = vmatmul.mubr.msk.bf16.gmra.mxu0 %vm344_vm1, %v723_v38 }
  0x92   : > { %2105 = vmatmul.mubr.msk.bf16.gmra.mxu1 %vm344_vm1, %v1034_v36  ;;  %2066 = vmatprep.mubr.msk.bf16.mxu0 %vm2315_vm0, %v2314_v1 }
  0x93   : > { %2108 = vmatprep.mubr.msk.bf16.mxu1 %vm2315_vm0, %v2314_v1 }
  0x99   : > { %2067 = vmatmul.mubr.msk.bf16.gmra.mxu0 %vm344_vm1, %v725_v44 }
  0x9a   : > { %2109 = vmatmul.mubr.msk.bf16.gmra.mxu1 %vm344_vm1, %v1036_v42  ;;  %2070 = vmatprep.mubr.msk.bf16.mxu0 %vm2315_vm0, %v2314_v1 }
  0x9b   : > { %2112 = vmatprep.mubr.msk.bf16.mxu1 %vm2315_vm0, %v2314_v1 }
  0xa1   : > { %2071 = vmatmul.mubr.msk.bf16.gmra.mxu0 %vm344_vm1, %v727_v53 }
  0xa2   : > { %2113 = vmatmul.mubr.msk.bf16.gmra.mxu1 %vm344_vm1, %v1038_v50  ;;  %2122 = vmatprep.mubr.msk.bf16.mxu0 %vm2315_vm0, %v2314_v1 }
  0xa3   : > { %2164 = vmatprep.mubr.msk.bf16.mxu1 %vm2315_vm0, %v2314_v1 }
  0xa9   : > { %2123 = vmatmul.mubr.msk.bf16.vlgmr.msra.gmra.mxu0 %vm344_vm1, %v2278_v58 }
  0xaa   : > { %2165 = vmatmul.mubr.msk.bf16.vlgmr.msra.gmra.mxu1 %vm344_vm1, %v1422_v56  ;;  %2126 = vmatprep.mubr.msk.bf16.mxu0 %vm2315_vm0, %v2314_v1 }
  0xab   : > { %2168 = vmatprep.mubr.msk.bf16.mxu1 %vm2315_vm0, %v2314_v1 }
  0xb1   : > { %2127 = vmatmul.mubr.msk.bf16.gmra.mxu0 %vm344_vm1, %v1839_v0 }
  0xb2   : > { %2169 = vmatmul.mubr.msk.bf16.gmra.mxu1 %vm344_vm1, %v1424_v62  ;;  %2130 = vmatprep.mubr.msk.bf16.mxu0 %vm2315_vm0, %v2314_v1 }
  0xb3   : > { %2172 = vmatprep.mubr.msk.bf16.mxu1 %vm2315_vm0, %v2314_v1 }
  0xb9   : > { %2131 = vmatmul.mubr.msk.bf16.gmra.mxu0 %vm344_vm1, %v2491_v49  ;;  %v1430_v49 = vsel %vm708_vm3, %v1427_v45, %v1429_v8 }
  0xba   : > { %2173 = vmatmul.mubr.msk.bf16.gmra.mxu1 %vm344_vm1, %v1426_v3  ;;  %2134 = vmatprep.mubr.msk.bf16.mxu0 %vm2315_vm0, %v2314_v1 }
  0xbb   : > { %2176 = vmatprep.mubr.msk.bf16.mxu1 %vm2315_vm0, %v2314_v1 }
  0xc1   : > { %2135 = vmatmul.mubr.msk.bf16.gmra.mxu0 %vm344_vm1, %v2508_v59  ;;  %v1432_v59 = vsel %vm708_vm3, %v1429_v8, %v1431_v10 }
  0xc2   : > { %2177 = vmatmul.mubr.msk.bf16.gmra.mxu1 %vm344_vm1, %v1428_v6  ;;  %2138 = vmatprep.mubr.msk.bf16.mxu0 %vm2315_vm0, %v2314_v1 }
  0xc3   : > { %2180 = vmatprep.mubr.msk.bf16.mxu1 %vm2315_vm0, %v2314_v1 }
  0xc9   : > { %2139 = vmatmul.mubr.msk.bf16.gmra.mxu0 %vm344_vm1, %v2532_v5  ;;  %v1434_v5 = vsel %vm708_vm3, %v1431_v10, %v1433_v12 }
  0xca   : > { %2181 = vmatmul.mubr.msk.bf16.gmra.mxu1 %vm344_vm1, %v1430_v49  ;;  %2142 = vmatprep.mubr.msk.bf16.mxu0 %vm2315_vm0, %v2314_v1 }
  0xcb   : > { %2184 = vmatprep.mubr.msk.bf16.mxu1 %vm2315_vm0, %v2314_v1 }
  0xd1   : > { %2143 = vmatmul.mubr.msk.bf16.gmra.mxu0 %vm344_vm1, %v2553_v13 }
  0xd2   : > { %2185 = vmatmul.mubr.msk.bf16.gmra.mxu1 %vm344_vm1, %v1432_v59  ;;  %2146 = vmatprep.mubr.msk.bf16.mxu0 %vm2315_vm0, %v2314_v1 }
  0xd3   : > { %2188 = vmatprep.mubr.msk.bf16.mxu1 %vm2315_vm0, %v2314_v1 }
  0xd9   : > { %v406_v17 = vpop.f32.mrf.mxu0  ;;  %2147 = vmatmul.mubr.msk.bf16.gmra.mxu0 %vm344_vm1, %v2566_v19  ;;  %v1437_v19 = vrot.slane %v2289_v23, 2 }
  0xda   : > { %v564_v15 = vpop.f32.mrf.mxu1  ;;  %2189 = vmatmul.mubr.msk.bf16.gmra.mxu1 %vm344_vm1, %v1434_v5  ;;  %2150 = vmatprep.mubr.msk.bf16.mxu0 %vm2315_vm0, %v2314_v1 }
  0xdb   : > { %2192 = vmatprep.mubr.msk.bf16.mxu1 %vm2315_vm0, %v2314_v1  ;;  %v2695_v13 = vadd.f32 %v564_v15, %v406_v17  ;;  %v1956_v20 = vpop.f32.mrf.mxu0  ;;  %v1438_v36 = vsel %vm708_vm3, %v1435_v16, %v1437_v19 }
  0xdc   : > { %v1998_v18 = vpop.f32.mrf.mxu1 }
  0xdd   : > { %v409_v24 = vpop.f32.mrf.mxu0 }
  0xde   : > { %v567_v21 = vpop.f32.mrf.mxu1 }
  0xdf   : > { %v2701_v27 = vadd.f32 %v567_v21, %v409_v24  ;;  %v1957_v28 = vpop.f32.mrf.mxu0 }
  0xe0   : > { %v1999_v26 = vpop.f32.mrf.mxu1 }
  0xe1   : > { %v414_v30 = vpop.f32.mrf.mxu0  ;;  %2151 = vmatmul.mubr.msk.bf16.gmra.mxu0 %vm344_vm1, %v2579_v25 }
  0xe2   : > { %v572_v29 = vpop.f32.mrf.mxu1  ;;  %2193 = vmatmul.mubr.msk.bf16.gmra.mxu1 %vm344_vm1, %v1436_v22  ;;  %2154 = vmatprep.mubr.msk.bf16.mxu0 %vm2315_vm0, %v2314_v1 }
  0xe3   : > { %2196 = vmatprep.mubr.msk.bf16.mxu1 %vm2315_vm0, %v2314_v1  ;;  %v2708_v33 = vadd.f32 %v572_v29, %v414_v30  ;;  %v1960_v34 = vpop.f32.mrf.mxu0 }
  0xe4   : > { %v2002_v32 = vpop.f32.mrf.mxu1 }
  0xe5   : > { %v417_v37 = vpop.f32.mrf.mxu0 }
  0xe6   : > { %v575_v35 = vpop.f32.mrf.mxu1 }
  0xe7   : > { %v2713_v39 = vadd.f32 %v575_v35, %v417_v37  ;;  %v1961_v40 = vpop.f32.mrf.mxu0 }
  0xe8   : > { %v2003_v38 = vpop.f32.mrf.mxu1 }
  0xe9   : > { %v422_v42 = vpop.f32.mrf.mxu0  ;;  %2155 = vmatmul.mubr.msk.bf16.gmra.mxu0 %vm344_vm1, %v2592_v31 }
  0xea   : > { %v580_v41 = vpop.f32.mrf.mxu1  ;;  %2197 = vmatmul.mubr.msk.bf16.gmra.mxu1 %vm344_vm1, %v1438_v36 }
  0xeb   : > { %v2718_v43 = vadd.f32 %v580_v41, %v422_v42  ;;  %v1964_v1 = vpop.f32.mrf.mxu0 }
  0xec   : > { %v2006_v25 = vpop.f32.mrf.mxu1 }
  0xed   : > { %v425_v46 = vpop.f32.mrf.mxu0 }
  0xee   : > { %v583_v44 = vpop.f32.mrf.mxu1 }
  0xef   : > { %v2720_v48 = vadd.f32 %v583_v44, %v425_v46  ;;  %v1965_v50 = vpop.f32.mrf.mxu0 }
  0xf0   : > { %v2007_v47 = vpop.f32.mrf.mxu1 }
  0xf1   : > { %v430_v52 = vpop.f32.mrf.mxu0 }
  0xf2   : > { %v588_v51 = vpop.f32.mrf.mxu1 }
  0xf3   : > { %v2722_v54 = vadd.f32 %v588_v51, %v430_v52  ;;  %v1968_v55 = vpop.f32.mrf.mxu0 }
  0xf4   : > { %v2010_v53 = vpop.f32.mrf.mxu1  ;;  %v2752_v55 = vld [vmem:[%s2912_s2] ss:$0 sm:$0xff] }
  0xf5   : > { %v433_v57 = vpop.f32.mrf.mxu0 }
  0xf6   : > { %v591_v56 = vpop.f32.mrf.mxu1 }
  0xf7   : > { %v2724_v31 = vadd.f32 %v591_v56, %v433_v57  ;;  %v1969_v60 = vpop.f32.mrf.mxu0 }
  0xf8   : > { %v2011_v58 = vpop.f32.mrf.mxu1 }
  0xf9   : > { %v438_v62 = vpop.f32.mrf.mxu0 }
  0xfa   : > { %v596_v61 = vpop.f32.mrf.mxu1 }
  0xfb   : > { %v2726_v0 = vadd.f32 %v596_v61, %v438_v62  ;;  %v1972_v2 = vpop.f32.mrf.mxu0 }
  0xfc   : > { %v2014_v63 = vpop.f32.mrf.mxu1 }
  0xfd   : > { %v441_v4 = vpop.f32.mrf.mxu0 }
  0xfe   : > { %v599_v3 = vpop.f32.mrf.mxu1 }
  0xff   : > { %v2728_v6 = vadd.f32 %v599_v3, %v441_v4  ;;  %v1973_v7 = vpop.f32.mrf.mxu0 }
 0x100   : > { %v2015_v45 = vpop.f32.mrf.mxu1 }
 0x101   : > { %v446_v49 = vpop.f32.mrf.mxu0 }
 0x102   : > { %v604_v8 = vpop.f32.mrf.mxu1 }
 0x103   : > { %v2730_v10 = vadd.f32 %v604_v8, %v446_v49  ;;  %v1976_v59 = vpop.f32.mrf.mxu0 }
 0x104   : > { %v2018_v9 = vpop.f32.mrf.mxu1 }
 0x105   : > { %v449_v12 = vpop.f32.mrf.mxu0 }
 0x106   : > { %v607_v11 = vpop.f32.mrf.mxu1 }
 0x107   : > { %v2732_v14 = vadd.f32 %v607_v11, %v449_v12  ;;  %v1977_v15 = vpop.f32.mrf.mxu0 }
 0x108   : > { %v2019_v5 = vpop.f32.mrf.mxu1 }
 0x109   : > { %v454_v17 = vpop.f32.mrf.mxu0 }
 0x10a   : > { %v612_v16 = vpop.f32.mrf.mxu1 }
 0x10b   : > { %v2734_v20 = vadd.f32 %v612_v16, %v454_v17  ;;  %v1980_v21 = vpop.f32.mrf.mxu0 }
 0x10c   : > { %v2022_v18 = vpop.f32.mrf.mxu1 }
 0x10d   : > { %v457_v23 = vpop.f32.mrf.mxu0 }
 0x10e   : > { %v615_v22 = vpop.f32.mrf.mxu1 }
 0x10f   : > { %v2736_v26 = vadd.f32 %v615_v22, %v457_v23  ;;  %v1981_v28 = vpop.f32.mrf.mxu0 }
 0x110   : > { %v2023_v24 = vpop.f32.mrf.mxu1 }
 0x111   : > { %v462_v19 = vpop.f32.mrf.mxu0 }
 0x112   : > { %v620_v29 = vpop.f32.mrf.mxu1 }
 0x113   : > { %v2738_v32 = vadd.f32 %v620_v29, %v462_v19  ;;  %v1984_v34 = vpop.f32.mrf.mxu0 }
 0x114   : > { %v2026_v30 = vpop.f32.mrf.mxu1 }
 0x115   : > { %v465_v36 = vpop.f32.mrf.mxu0 }
 0x116   : > { %v623_v35 = vpop.f32.mrf.mxu1 }
 0x117   : > { %v2740_v38 = vadd.f32 %v623_v35, %v465_v36  ;;  %v1985_v40 = vpop.f32.mrf.mxu0 }
 0x118   : > { %v2027_v37 = vpop.f32.mrf.mxu1 }
 0x119   : > { %v470_v42 = vpop.f32.mrf.mxu0 }
 0x11a   : > { %v628_v41 = vpop.f32.mrf.mxu1 }
 0x11b   : > { %v2742_v1 = vadd.f32 %v628_v41, %v470_v42  ;;  %v1988_v44 = vpop.f32.mrf.mxu0 }
 0x11c   : > { %v2030_v25 = vpop.f32.mrf.mxu1 }
 0x11d   : > { %v473_v47 = vpop.f32.mrf.mxu0 }
 0x11e   : > { %v631_v46 = vpop.f32.mrf.mxu1 }
 0x11f   : > { %v2744_v51 = vadd.f32 %v631_v46, %v473_v47  ;;  %v1989_v52 = vpop.f32.mrf.mxu0 }
 0x120   : > { %v2031_v50 = vpop.f32.mrf.mxu1 }
 0x121   : > { %v807_v56 = vpop.f32.mrf.mxu0 }
 0x122   : > { %v2747_v53 = vpop.f32.mrf.mxu1  ;;  %v878_v58 = vadd.f32 %v807_v56, %v2695_v13 }
 0x123   : > { %v2040_v60 = vpop.f32.mrf.mxu0 }
 0x124   : > { %v2082_v57 = vpop.f32.mrf.mxu1  ;;  %v902_v62 = vadd.f32 %v2752_v55, %v878_v58 }
 0x125   : > { %v810_v63 = vpop.f32.mrf.mxu0 }
 0x126   : > { %v2760_v61 = vpop.f32.mrf.mxu1  ;;  %920 = vst [vmem:[%s2758_s11] sm:$0xff] %v902_v62  ;;  %v879_v3 = vadd.f32 %v810_v63, %v2701_v27 }
 0x127   : > { %v2041_v4 = vpop.f32.mrf.mxu0 }
 0x128   : > { %v2083_v2 = vpop.f32.mrf.mxu1  ;;  %v903_v45 = vadd.f32 %v2752_v55, %v879_v3 }
 0x129   : > { %v815_v7 = vpop.f32.mrf.mxu0 }
 0x12a   : > { %v2765_v13 = vpop.f32.mrf.mxu1  ;;  %921 = vst [vmem:[%s2758_s11 + $0x8] sm:$0xff] %v903_v45  ;;  %v880_v49 = vadd.f32 %v815_v7, %v2708_v33 }
 0x12b   : > { %v2044_v9 = vpop.f32.mrf.mxu0 }
 0x12c   : > { %v2086_v8 = vpop.f32.mrf.mxu1  ;;  %v904_v11 = vadd.f32 %v2752_v55, %v880_v49 }
 0x12d   : > { %v818_v12 = vpop.f32.mrf.mxu0 }
 0x12e   : > { %v2770_v59 = vpop.f32.mrf.mxu1  ;;  %922 = vst [vmem:[%s2758_s11 + $0x10] sm:$0xff] %v904_v11  ;;  %v881_v27 = vadd.f32 %v818_v12, %v2713_v39 }
 0x12f   : > { %v2045_v15 = vpop.f32.mrf.mxu0 }
 0x130   : > { %v2087_v5 = vpop.f32.mrf.mxu1  ;;  %v905_v17 = vadd.f32 %v2752_v55, %v881_v27 }
 0x131   : > { %v823_v18 = vpop.f32.mrf.mxu0 }
 0x132   : > { %v2775_v16 = vpop.f32.mrf.mxu1  ;;  %923 = vst [vmem:[%s2758_s11 + $0x18] sm:$0xff] %v905_v17  ;;  %v882_v33 = vadd.f32 %v823_v18, %v2718_v43 }
 0x133   : > { %v2048_v22 = vpop.f32.mrf.mxu0 }
 0x134   : > { %v2090_v21 = vpop.f32.mrf.mxu1  ;;  %v906_v24 = vadd.f32 %v2752_v55, %v882_v33 }
 0x135   : > { %v826_v28 = vpop.f32.mrf.mxu0 }
 0x136   : > { %v2780_v23 = vpop.f32.mrf.mxu1  ;;  %924 = vst [vmem:[%s2758_s11 + $0x20] sm:$0xff] %v906_v24  ;;  %v883_v39 = vadd.f32 %v826_v28, %v2720_v48 }
 0x137   : > { %v2049_v19 = vpop.f32.mrf.mxu0 }
 0x138   : > { %v2091_v29 = vpop.f32.mrf.mxu1  ;;  %v907_v34 = vadd.f32 %v2752_v55, %v883_v39 }
 0x139   : > { %v831_v35 = vpop.f32.mrf.mxu0 }
 0x13a   : > { %v2785_v30 = vpop.f32.mrf.mxu1  ;;  %925 = vst [vmem:[%s2758_s11 + $0x28] sm:$0xff] %v907_v34  ;;  %v884_v43 = vadd.f32 %v831_v35, %v2722_v54 }
 0x13b   : > { %v2052_v37 = vpop.f32.mrf.mxu0 }
 0x13c   : > { %v2094_v36 = vpop.f32.mrf.mxu1  ;;  %v908_v41 = vadd.f32 %v2752_v55, %v884_v43 }
 0x13d   : > { %v834_v42 = vpop.f32.mrf.mxu0 }
 0x13e   : > { %v2790_v40 = vpop.f32.mrf.mxu1  ;;  %926 = vst [vmem:[%s2758_s11 + $0x30] sm:$0xff] %v908_v41  ;;  %v885_v48 = vadd.f32 %v834_v42, %v2724_v31 }
 0x13f   : > { %v2053_v44 = vpop.f32.mrf.mxu0 }
 0x140   : > { %v2095_v25 = vpop.f32.mrf.mxu1  ;;  %v909_v47 = vadd.f32 %v2752_v55, %v885_v48 }
 0x141   : > { %v839_v50 = vpop.f32.mrf.mxu0 }
 0x142   : > { %v2795_v46 = vpop.f32.mrf.mxu1  ;;  %927 = vst [vmem:[%s2758_s11 + $0x38] sm:$0xff] %v909_v47  ;;  %v886_v54 = vadd.f32 %v839_v50, %v2726_v0 }
 0x143   : > { %v2056_v56 = vpop.f32.mrf.mxu0 }
 0x144   : > { %v2098_v52 = vpop.f32.mrf.mxu1  ;;  %v910_v58 = vadd.f32 %v2752_v55, %v886_v54 }
 0x145   : > { %v842_v60 = vpop.f32.mrf.mxu0 }
 0x146   : > { %v2800_v57 = vpop.f32.mrf.mxu1  ;;  %928 = vst [vmem:[%s2758_s11 + $0x40] sm:$0xff] %v910_v58  ;;  %v887_v31 = vadd.f32 %v842_v60, %v2728_v6 }
 0x147   : > { %v2057_v63 = vpop.f32.mrf.mxu0 }
 0x148   : > { %v2099_v62 = vpop.f32.mrf.mxu1  ;;  %v911_v3 = vadd.f32 %v2752_v55, %v887_v31 }
 0x149   : > { %v847_v4 = vpop.f32.mrf.mxu0 }
 0x14a   : > { %v2805_v2 = vpop.f32.mrf.mxu1  ;;  %929 = vst [vmem:[%s2758_s11 + $0x48] sm:$0xff] %v911_v3  ;;  %v888_v0 = vadd.f32 %v847_v4, %v2730_v10 }
 0x14b   : > { %v2060_v7 = vpop.f32.mrf.mxu0 }
 0x14c   : > { %v2102_v45 = vpop.f32.mrf.mxu1  ;;  %v912_v49 = vadd.f32 %v2752_v55, %v888_v0 }
 0x14d   : > { %v850_v9 = vpop.f32.mrf.mxu0 }
 0x14e   : > { %v2810_v8 = vpop.f32.mrf.mxu1  ;;  %930 = vst [vmem:[%s2758_s11 + $0x50] sm:$0xff] %v912_v49  ;;  %v889_v6 = vadd.f32 %v850_v9, %v2732_v14 }
 0x14f   : > { %v2061_v12 = vpop.f32.mrf.mxu0 }
 0x150   : > { %v2103_v11 = vpop.f32.mrf.mxu1  ;;  %v913_v27 = vadd.f32 %v2752_v55, %v889_v6 }
 0x151   : > { %v855_v15 = vpop.f32.mrf.mxu0 }
 0x152   : > { %v2815_v5 = vpop.f32.mrf.mxu1  ;;  %931 = vst [vmem:[%s2758_s11 + $0x58] sm:$0xff] %v913_v27  ;;  %v890_v10 = vadd.f32 %v855_v15, %v2734_v20 }
 0x153   : > { %v2064_v18 = vpop.f32.mrf.mxu0 }
 0x154   : > { %v2106_v17 = vpop.f32.mrf.mxu1  ;;  %v914_v33 = vadd.f32 %v2752_v55, %v890_v10 }
 0x155   : > { %v858_v22 = vpop.f32.mrf.mxu0 }
 0x156   : > { %v2820_v21 = vpop.f32.mrf.mxu1  ;;  %932 = vst [vmem:[%s2758_s11 + $0x60] sm:$0xff] %v914_v33  ;;  %v891_v14 = vadd.f32 %v858_v22, %v2736_v26 }
 0x157   : > { %v2065_v28 = vpop.f32.mrf.mxu0 }
 0x158   : > { %v2107_v24 = vpop.f32.mrf.mxu1  ;;  %v915_v39 = vadd.f32 %v2752_v55, %v891_v14 }
 0x159   : > { %v863_v19 = vpop.f32.mrf.mxu0 }
 0x15a   : > { %v2825_v29 = vpop.f32.mrf.mxu1  ;;  %933 = vst [vmem:[%s2758_s11 + $0x68] sm:$0xff] %v915_v39  ;;  %v892_v20 = vadd.f32 %v863_v19, %v2738_v32 }
 0x15b   : > { %v2068_v35 = vpop.f32.mrf.mxu0 }
 0x15c   : > { %v2110_v34 = vpop.f32.mrf.mxu1  ;;  %v916_v43 = vadd.f32 %v2752_v55, %v892_v20 }
 0x15d   : > { %v866_v37 = vpop.f32.mrf.mxu0 }
 0x15e   : > { %v2830_v36 = vpop.f32.mrf.mxu1  ;;  %934 = vst [vmem:[%s2758_s11 + $0x70] sm:$0xff] %v916_v43  ;;  %v893_v26 = vadd.f32 %v866_v37, %v2740_v38 }
 0x15f   : > { %v2069_v42 = vpop.f32.mrf.mxu0 }
 0x160   : > { %v2111_v41 = vpop.f32.mrf.mxu1  ;;  %v917_v48 = vadd.f32 %v2752_v55, %v893_v26 }
 0x161   : > { %v871_v44 = vpop.f32.mrf.mxu0 }
 0x162   : > { %v2835_v25 = vpop.f32.mrf.mxu1  ;;  %935 = vst [vmem:[%s2758_s11 + $0x78] sm:$0xff] %v917_v48  ;;  %v894_v32 = vadd.f32 %v871_v44, %v2742_v1 }
 0x163   : > { %v2072_v50 = vpop.f32.mrf.mxu0 }
 0x164   : > { %v2114_v47 = vpop.f32.mrf.mxu1  ;;  %v918_v54 = vadd.f32 %v2752_v55, %v894_v32 }
 0x165   : > { %v874_v56 = vpop.f32.mrf.mxu0 }
 0x166   : > { %v2840_v52 = vpop.f32.mrf.mxu1  ;;  %936 = vst [vmem:[%s2758_s11 + $0x80] sm:$0xff] %v918_v54  ;;  %v895_v38 = vadd.f32 %v874_v56, %v2744_v51 }
 0x167   : > { %v2073_v60 = vpop.f32.mrf.mxu0 }
 0x168   : > { %v2115_v58 = vpop.f32.mrf.mxu1  ;;  %v919_v31 = vadd.f32 %v2752_v55, %v895_v38 }
 0x169   : > { %v1276_v63 = vpop.f32.mrf.mxu0 }
 0x16a   : > { %v1518_v62 = vpop.f32.mrf.mxu1  ;;  %937 = vst [vmem:[%s2758_s11 + $0x88] sm:$0xff] %v919_v31  ;;  %v1277_v1 = vadd.f32 %v1276_v63, %v2747_v53 }
 0x16b   : > { %v2124_v4 = vpop.f32.mrf.mxu0 }
 0x16c   : > { %v2166_v3 = vpop.f32.mrf.mxu1  ;;  %v1589_v0 = vadd.f32 %v1518_v62, %v1277_v1 }
 0x16d   : > { %v1279_v7 = vpop.f32.mrf.mxu0 }
 0x16e   : > { %v1521_v45 = vpop.f32.mrf.mxu1  ;;  %v1607_v9 = vadd.f32 %v2752_v55, %v1589_v0  ;;  %v1280_v51 = vadd.f32 %v1279_v7, %v2760_v61 }
 0x16f   : > { %v2125_v11 = vpop.f32.mrf.mxu0 }
 0x170   : > { %v2167_v49 = vpop.f32.mrf.mxu1  ;;  %1625 = vst [vmem:[%s2758_s11 + $0x90] sm:$0xff] %v1607_v9  ;;  %v1590_v12 = vadd.f32 %v1521_v45, %v1280_v51 }
 0x171   : > { %v1284_v27 = vpop.f32.mrf.mxu0 }
 0x172   : > { %v1526_v6 = vpop.f32.mrf.mxu1  ;;  %v1608_v17 = vadd.f32 %v2752_v55, %v1590_v12  ;;  %v1285_v53 = vadd.f32 %v1284_v27, %v2765_v13 }
 0x173   : > { %v2128_v10 = vpop.f32.mrf.mxu0 }
 0x174   : > { %v2170_v15 = vpop.f32.mrf.mxu1  ;;  %1626 = vst [vmem:[%s2758_s11 + $0x98] sm:$0xff] %v1608_v17  ;;  %v1591_v33 = vadd.f32 %v1526_v6, %v1285_v53 }
 0x175   : > { %v1287_v22 = vpop.f32.mrf.mxu0 }
 0x176   : > { %v1529_v18 = vpop.f32.mrf.mxu1  ;;  %v1609_v61 = vadd.f32 %v2752_v55, %v1591_v33  ;;  %v1288_v14 = vadd.f32 %v1287_v22, %v2770_v59 }
 0x177   : > { %v2129_v28 = vpop.f32.mrf.mxu0 }
 0x178   : > { %v2171_v24 = vpop.f32.mrf.mxu1  ;;  %1627 = vst [vmem:[%s2758_s11 + $0xa0] sm:$0xff] %v1609_v61  ;;  %v1592_v19 = vadd.f32 %v1529_v18, %v1288_v14 }
 0x179   : > { %v1292_v34 = vpop.f32.mrf.mxu0 }
 0x17a   : > { %v1534_v39 = vpop.f32.mrf.mxu1  ;;  %v1610_v13 = vadd.f32 %v2752_v55, %v1592_v19  ;;  %v1293_v35 = vadd.f32 %v1292_v34, %v2775_v16 }
 0x17b   : > { %v2132_v43 = vpop.f32.mrf.mxu0 }
 0x17c   : > { %v2174_v20 = vpop.f32.mrf.mxu1  ;;  %1628 = vst [vmem:[%s2758_s11 + $0xa8] sm:$0xff] %v1610_v13  ;;  %v1593_v41 = vadd.f32 %v1534_v39, %v1293_v35 }
 0x17d   : > { %v1295_v26 = vpop.f32.mrf.mxu0 }
 0x17e   : > { %v1537_v37 = vpop.f32.mrf.mxu1  ;;  %v1611_v59 = vadd.f32 %v2752_v55, %v1593_v41  ;;  %v1296_v48 = vadd.f32 %v1295_v26, %v2780_v23 }
 0x17f   : > { %v2133_v44 = vpop.f32.mrf.mxu0 }
 0x180   : > { %v2175_v42 = vpop.f32.mrf.mxu1  ;;  %1629 = vst [vmem:[%s2758_s11 + $0xb0] sm:$0xff] %v1611_v59  ;;  %v1594_v32 = vadd.f32 %v1537_v37, %v1296_v48 }
 0x181   : > { %v1300_v50 = vpop.f32.mrf.mxu0 }
 0x182   : > { %v1542_v47 = vpop.f32.mrf.mxu1  ;;  %v1612_v16 = vadd.f32 %v2752_v55, %v1594_v32  ;;  %v1301_v56 = vadd.f32 %v1300_v50, %v2785_v30 }
 0x183   : > { %v2136_v58 = vpop.f32.mrf.mxu0 }
 0x184   : > { %v2178_v54 = vpop.f32.mrf.mxu1  ;;  %1630 = vst [vmem:[%s2758_s11 + $0xb8] sm:$0xff] %v1612_v16  ;;  %v1595_v60 = vadd.f32 %v1542_v47, %v1301_v56 }
 0x185   : > { %v1303_v62 = vpop.f32.mrf.mxu0 }
 0x186   : > { %v1545_v38 = vpop.f32.mrf.mxu1  ;;  %v1613_v23 = vadd.f32 %v2752_v55, %v1595_v60  ;;  %v1304_v63 = vadd.f32 %v1303_v62, %v2790_v40 }
 0x187   : > { %v2137_v3 = vpop.f32.mrf.mxu0 }
 0x188   : > { %v2179_v31 = vpop.f32.mrf.mxu1  ;;  %1631 = vst [vmem:[%s2758_s11 + $0xc0] sm:$0xff] %v1613_v23  ;;  %v1596_v4 = vadd.f32 %v1545_v38, %v1304_v63 }
 0x189   : > { %v1308_v45 = vpop.f32.mrf.mxu0 }
 0x18a   : > { %v1550_v1 = vpop.f32.mrf.mxu1  ;;  %v1614_v30 = vadd.f32 %v2752_v55, %v1596_v4  ;;  %v1309_v7 = vadd.f32 %v1308_v45, %v2795_v46 }
 0x18b   : > { %v2140_v49 = vpop.f32.mrf.mxu0 }
 0x18c   : > { %v2182_v0 = vpop.f32.mrf.mxu1  ;;  %1632 = vst [vmem:[%s2758_s11 + $0xc8] sm:$0xff] %v1614_v30  ;;  %v1597_v51 = vadd.f32 %v1550_v1, %v1309_v7 }
 0x18d   : > { %v1311_v11 = vpop.f32.mrf.mxu0 }
 0x18e   : > { %v1553_v9 = vpop.f32.mrf.mxu1  ;;  %v1615_v40 = vadd.f32 %v2752_v55, %v1597_v51  ;;  %v1312_v12 = vadd.f32 %v1311_v11, %v2800_v57 }
 0x18f   : > { %v2141_v27 = vpop.f32.mrf.mxu0 }
 0x190   : > { %v2183_v6 = vpop.f32.mrf.mxu1  ;;  %1633 = vst [vmem:[%s2758_s11 + $0xd0] sm:$0xff] %v1615_v40  ;;  %v1598_v17 = vadd.f32 %v1553_v9, %v1312_v12 }
 0x191   : > { %v1316_v53 = vpop.f32.mrf.mxu0 }
 0x192   : > { %v1558_v15 = vpop.f32.mrf.mxu1  ;;  %v1616_v46 = vadd.f32 %v2752_v55, %v1598_v17  ;;  %v1317_v18 = vadd.f32 %v1316_v53, %v2805_v2 }
 0x193   : > { %v2144_v33 = vpop.f32.mrf.mxu0 }
 0x194   : > { %v2186_v10 = vpop.f32.mrf.mxu1  ;;  %1634 = vst [vmem:[%s2758_s11 + $0xd8] sm:$0xff] %v1616_v46  ;;  %v1599_v24 = vadd.f32 %v1558_v15, %v1317_v18 }
 0x195   : > { %v1319_v61 = vpop.f32.mrf.mxu0 }
 0x196   : > { %v1561_v22 = vpop.f32.mrf.mxu1  ;;  %v1617_v57 = vadd.f32 %v2752_v55, %v1599_v24  ;;  %v1320_v28 = vadd.f32 %v1319_v61, %v2810_v8 }
 0x197   : > { %v2145_v39 = vpop.f32.mrf.mxu0 }
 0x198   : > { %v2187_v14 = vpop.f32.mrf.mxu1  ;;  %1635 = vst [vmem:[%s2758_s11 + $0xe0] sm:$0xff] %v1617_v57  ;;  %v1600_v34 = vadd.f32 %v1561_v22, %v1320_v28 }
 0x199   : > { %v1324_v20 = vpop.f32.mrf.mxu0 }
 0x19a   : > { %v1566_v19 = vpop.f32.mrf.mxu1  ;;  %v1618_v2 = vadd.f32 %v2752_v55, %v1600_v34  ;;  %v1325_v35 = vadd.f32 %v1324_v20, %v2815_v5 }
 0x19b   : > { %v2148_v43 = vpop.f32.mrf.mxu0 }
 0x19c   : > { %v2190_v13 = vpop.f32.mrf.mxu1  ;;  %1636 = vst [vmem:[%s2758_s11 + $0xe8] sm:$0xff] %v1618_v2  ;;  %v1601_v41 = vadd.f32 %v1566_v19, %v1325_v35 }
 0x19d   : > { %v1327_v26 = vpop.f32.mrf.mxu0 }
 0x19e   : > { %v1569_v37 = vpop.f32.mrf.mxu1  ;;  %v1619_v8 = vadd.f32 %v2752_v55, %v1601_v41  ;;  %v1328_v59 = vadd.f32 %v1327_v26, %v2820_v21 }
 0x19f   : > { %v2149_v48 = vpop.f32.mrf.mxu0 }
 0x1a0   : > { %v2191_v42 = vpop.f32.mrf.mxu1  ;;  %1637 = vst [vmem:[%s2758_s11 + $0xf0] sm:$0xff] %v1619_v8  ;;  %v1602_v47 = vadd.f32 %v1569_v37, %v1328_v59 }
 0x1a1   : > { %v1332_v32 = vpop.f32.mrf.mxu0 }
 0x1a2   : > { %v1574_v44 = vpop.f32.mrf.mxu1  ;;  %v1620_v5 = vadd.f32 %v2752_v55, %v1602_v47  ;;  %v1333_v54 = vadd.f32 %v1332_v32, %v2825_v29 }
 0x1a3   : > { %v2152_v16 = vpop.f32.mrf.mxu0 }
 0x1a4   : > { %v2194_v50 = vpop.f32.mrf.mxu1  ;;  %1638 = vst [vmem:[%s2758_s11 + $0xf8] sm:$0xff] %v1620_v5  ;;  %v1603_v58 = vadd.f32 %v1574_v44, %v1333_v54 }
 0x1a5   : > { %v1335_v38 = vpop.f32.mrf.mxu0 }
 0x1a6   : > { %v1577_v56 = vpop.f32.mrf.mxu1  ;;  %v1621_v21 = vadd.f32 %v2752_v55, %v1603_v58  ;;  %v1336_v62 = vadd.f32 %v1335_v38, %v2830_v36 }
 0x1a7   : > { %v2153_v31 = vpop.f32.mrf.mxu0 }
 0x1a8   : > { %v2195_v60 = vpop.f32.mrf.mxu1  ;;  %1639 = vst [vmem:[%s2758_s11 + $0x100] sm:$0xff] %v1621_v21  ;;  %v1604_v63 = vadd.f32 %v1577_v56, %v1336_v62 }
 0x1a9   : > { %v1340_v3 = vpop.f32.mrf.mxu0 }
 0x1aa   : > { %v1582_v23 = vpop.f32.mrf.mxu1  ;;  %v1622_v29 = vadd.f32 %v2752_v55, %v1604_v63  ;;  %v1341_v4 = vadd.f32 %v1340_v3, %v2835_v25 }
 0x1ab   : > { %v2156_v45 = vpop.f32.mrf.mxu0 }
 0x1ac   : > { %v2198_v1 = vpop.f32.mrf.mxu1  ;;  %1640 = vst [vmem:[%s2758_s11 + $0x108] sm:$0xff] %v1622_v29  ;;  %v1605_v30 = vadd.f32 %v1582_v23, %v1341_v4 }
 0x1ad   : > { %v1343_v7 = vpop.f32.mrf.mxu0 }
 0x1ae   : > { %v1585_v0 = vpop.f32.mrf.mxu1  ;;  %v1623_v36 = vadd.f32 %v2752_v55, %v1605_v30  ;;  %v1344_v9 = vadd.f32 %v1343_v7, %v2840_v52 }
 0x1af   : > { %v2157_v51 = vpop.f32.mrf.mxu0 }
 0x1b0   : > { %v2199_v49 = vpop.f32.mrf.mxu1  ;;  %1641 = vst [vmem:[%s2758_s11 + $0x110] sm:$0xff] %v1623_v36  ;;  %v1606_v11 = vadd.f32 %v1585_v0, %v1344_v9 }
 0x1b2   : > { %v1624_v6 = vadd.f32 %v2752_v55, %v1606_v11 }
 0x1b4   : > { %1642 = vst [vmem:[%s2758_s11 + $0x118] sm:$0xff] %v1624_v6 }
 0x1b5 PF: > { %s13_s14 = sadd.s32 1, %s2312_s14   ;;  %s2914_s12 = smov %s2308_s13 }
 0x1b6   : > { %p10_p5 = scmp.ge.s32.totalorder %s13_s14, 4   ;;  %s2915_s13 = smov %s2917_s15 }
 0x1b8   :  { %12 = sbr.rel (!%p10_p5) target bundleno = 2 (0x2), region = 68 }

</bundles_post_ra>
